<compile_context>
chip_gen: v5e
topology: v5e:2x2
jax: 0.10.0
libtpu: 0.0.40
codegen_flags: <defaults>
</compile_context>

<pallas_src>
import jax
import jax.numpy as jnp
from jax import lax
from jax.experimental import pallas as pl
from jax.experimental.pallas import tpu as pltpu

# ---------------- synthetic small config ----------------
BATCH = 2
SEQ_LEN = 4
SHOT_NUM = 4          # cfg.shot_num
PLACE_FEAT_DIM = 16   # cfg.model.place_feat_dim
SIM_CHANNEL = 8       # cfg.model.sim_channel
LSTM_HIDDEN = 32      # cfg.model.lstm_hidden_size
# cfg.model.bidirectional = True
INPUT_DIM = PLACE_FEAT_DIM + SIM_CHANNEL

VMEM = pl.BlockSpec(memory_space=pltpu.MemorySpace.VMEM)


# ---------------- fused forward: BNet + biLSTM + head in one kernel ----------------
def lgss_one_forward(x, kp):
    B, T, S, D = x.shape
    C = SIM_CHANNEL
    H = LSTM_HIDDEN
    f32 = jnp.float32

    def kernel(x_ref, wctx_ref, bctx_ref, wcos1_ref, wcos2_ref, bcos_ref, sel_ref,
               wih_ctx_ref, wih_sim_ref, whh_ref, bf_ref, br_ref,
               w1_ref, b1_ref, w2_ref, b2_ref, out_ref, lstm_sc):
        x2 = x_ref[...]                                    # (T*B, S*D) time-major rows

        # ---- BNet context branch: one MXU push, then max over C lane-groups ----
        ctx_all = jnp.dot(x2, wctx_ref[...],
                          preferred_element_type=f32) + bctx_ref[...]     # (T*B, C*D)
        ctx = ctx_all[:, 0:D]
        for c in range(1, C):
            ctx = jnp.maximum(ctx, ctx_all[:, c * D:(c + 1) * D])          # (T*B, D)

        # ---- BNet Cos branch: conv halves as matmuls, segmented sums as matmuls ----
        p1 = jnp.dot(x2, wcos1_ref[...], preferred_element_type=f32) + bcos_ref[...]
        p2 = jnp.dot(x2, wcos2_ref[...], preferred_element_type=f32) + bcos_ref[...]
        sel = sel_ref[...]                                                  # (C*D, C)
        dot12 = jnp.dot(p1 * p2, sel, preferred_element_type=f32)           # (T*B, C)
        n1sq = jnp.dot(p1 * p1, sel, preferred_element_type=f32)
        n2sq = jnp.dot(p2 * p2, sel, preferred_element_type=f32)
        # torch cosine_similarity: dot / max(||p1||*||p2||, 1e-8)
        sim = dot12 * lax.rsqrt(jnp.maximum(n1sq * n2sq, 1e-16))            # (T*B, C)

        # ---- LSTM: hoist x @ W_ih for both directions out of the recurrence ----
        # gx[:, :4H] == bound @ W_ih_f ; gx[:, 4H:] == bound @ W_ih_r
        gx = (jnp.dot(ctx, wih_ctx_ref[...], preferred_element_type=f32)
              + jnp.dot(sim, wih_sim_ref[...], preferred_element_type=f32))  # (T*B, 8H)

        whh = whh_ref[...]           # (2H, 8H) block-diag(w_hh_f, w_hh_r)
        b_f = bf_ref[...]            # (1, 4H)
        b_r = br_ref[...]            # (1, 4H)

        def cell(gates, c_prev):     # PyTorch gate order: i, f, g, o
            i = jax.nn.sigmoid(gates[:, 0:H])
            f = jax.nn.sigmoid(gates[:, H:2 * H])
            g = jnp.tanh(gates[:, 2 * H:3 * H])
            o = jax.nn.sigmoid(gates[:, 3 * H:4 * H])
            c_new = f * c_prev + i * g
            h_new = o * jnp.tanh(c_new)
            return h_new, c_new

        h_f = jnp.zeros((B, H), f32)
        c_f = jnp.zeros((B, H), f32)
        h_r = jnp.zeros((B, H), f32)
        c_r = jnp.zeros((B, H), f32)

        # Fully unrolled short time loop: fwd and rev chains share one fused
        # (B, 2H) @ (2H, 8H) recurrent MXU push per step.
        for k in range(T):
            t = k
            tr = T - 1 - k
            gh = jnp.dot(jnp.concatenate([h_f, h_r], axis=-1), whh,
                         preferred_element_type=f32)                         # (B, 8H)
            gates_f = gx[t * B:(t + 1) * B, 0:4 * H] + gh[:, 0:4 * H] + b_f
            gates_r = gx[tr * B:(tr + 1) * B, 4 * H:8 * H] + gh[:, 4 * H:8 * H] + b_r
            h_f, c_f = cell(gates_f, c_f)
            h_r, c_r = cell(gates_r, c_r)
            lstm_sc[t * B:(t + 1) * B, 0:H] = h_f
            lstm_sc[tr * B:(tr + 1) * B, H:2 * H] = h_r

        lstm_tm = lstm_sc[...]                                               # (T*B, 2H)

        # ---- head: fc1 (zero-padded to 128 lanes) + ReLU + fc2 ----
        h1 = jnp.maximum(
            jnp.dot(lstm_tm, w1_ref[...], preferred_element_type=f32) + b1_ref[...], 0.0)
        out_ref[...] = jnp.dot(h1, w2_ref[...], preferred_element_type=f32) + b2_ref[...]

    # time-major, lane-dense input layout: row t*B + b, feature s*D + d
    x_tm = jnp.transpose(x.astype(f32), (1, 0, 2, 3)).reshape(T * B, S * D)

    out_tm = pl.pallas_call(
        kernel,
        out_shape=jax.ShapeDtypeStruct((T * B, 2), f32),
        in_specs=[VMEM] * 16,
        out_specs=VMEM,
        scratch_shapes=[pltpu.VMEM((T * B, 2 * H), f32)],
    )(x_tm, kp['w_ctx_big'], kp['b_ctx_big'], kp['w_cos1_big'], kp['w_cos2_big'],
      kp['b_cos_big'], kp['sel'], kp['w_ih_ctx'], kp['w_ih_sim'], kp['w_hh_blk'],
      kp['b_f'], kp['b_r'], kp['w1p'], kp['b1p'], kp['w2p'], kp['b2'])

    # back to batch-major row order: same as out.view(-1, 2) in PyTorch
    return jnp.transpose(out_tm.reshape(T, B, 2), (1, 0, 2)).reshape(B * T, 2)


lgss_one_forward = jax.jit(lgss_one_forward)


# ---------------- deterministic synthetic parameters (logical layout) ----------------
def init_params(key):
    ks = jax.random.split(key, 14)
    r = lambda k, s, sc=0.1: (jax.random.normal(k, s, jnp.float32) * sc)
    C, S, D, H = SIM_CHANNEL, SHOT_NUM, PLACE_FEAT_DIM, LSTM_HIDDEN
    Din = INPUT_DIM
    return {
        # BNet.conv1: Conv2d(1, C, (S,1)) -> weight (C,1,S,1) squeezed to (C,S)
        'w_ctx': r(ks[0], (C, S)), 'b_ctx': r(ks[1], (C,)),
        # Cos.conv1: Conv2d(1, C, (S//2,1)) -> (C, S//2)
        'w_cos': r(ks[2], (C, S // 2)), 'b_cos': r(ks[3], (C,)),
        # LSTM (pre-transposed for x @ W):  W_ih (Din,4H), W_hh (H,4H), b = b_ih + b_hh (1,4H)
        'w_ih_f': r(ks[4], (Din, 4 * H)), 'w_hh_f': r(ks[5], (H, 4 * H)), 'b_f': r(ks[6], (1, 4 * H)),
        'w_ih_r': r(ks[7], (Din, 4 * H)), 'w_hh_r': r(ks[8], (H, 4 * H)), 'b_r': r(ks[9], (1, 4 * H)),
        # fc1: Linear(2H, 100), fc2: Linear(100, 2) (pre-transposed)
        'w1': r(ks[10], (2 * H, 100)), 'b1': r(ks[11], (1, 100)),
        'w2': r(ks[12], (100, 2)), 'b2': r(ks[13], (1, 2)),
    }


# ---------------- one-time packing into the kernel's MXU-friendly layout ----------------
def pack_params(p):
    C, S, D, H = SIM_CHANNEL, SHOT_NUM, PLACE_FEAT_DIM, LSTM_HIDDEN
    half = S // 2
    f32 = jnp.float32
    eye_d = jnp.eye(D, dtype=f32)

    def expand_conv(w_cs):
        # (C, S) conv weight -> (S*D, C*D) block weight so the depthwise-over-D
        # conv becomes x2d (rows, S*D) @ W (S*D, C*D) on the MXU.
        return jnp.einsum('cs,de->sdce', w_cs, eye_d).reshape(S * D, C * D)

    wcos1 = jnp.zeros((C, S), f32).at[:, :half].set(p['w_cos'])   # first half shots
    wcos2 = jnp.zeros((C, S), f32).at[:, half:].set(p['w_cos'])   # second half shots

    wih_both = jnp.concatenate([p['w_ih_f'], p['w_ih_r']], axis=1)          # (Din, 8H)
    whh_blk = (jnp.zeros((2 * H, 8 * H), f32)
               .at[:H, :4 * H].set(p['w_hh_f'])
               .at[H:, 4 * H:].set(p['w_hh_r']))                             # block diag

    w1p = jnp.zeros((2 * H, 128), f32).at[:, :100].set(p['w1'])
    b1p = jnp.zeros((1, 128), f32).at[:, :100].set(p['b1'])
    w2p = jnp.zeros((128, 2), f32).at[:100, :].set(p['w2'])

    return {
        'w_ctx_big': expand_conv(p['w_ctx']),
        'b_ctx_big': jnp.repeat(p['b_ctx'], D)[None, :],                     # (1, C*D)
        'w_cos1_big': expand_conv(wcos1),
        'w_cos2_big': expand_conv(wcos2),
        'b_cos_big': jnp.repeat(p['b_cos'], D)[None, :],                     # (1, C*D)
        'sel': jnp.repeat(jnp.eye(C, dtype=f32), D, axis=0),                 # (C*D, C)
        'w_ih_ctx': wih_both[:D],                                            # (D, 8H)
        'w_ih_sim': wih_both[D:],                                            # (C, 8H)
        'w_hh_blk': whh_blk,                                                 # (2H, 8H)
        'b_f': p['b_f'], 'b_r': p['b_r'],
        'w1p': w1p, 'b1p': b1p, 'w2p': w2p, 'b2': p['b2'],
    }


# ---------------- pure-JAX reference (same semantics as the PyTorch forward) ----------------
def reference_forward(x, p):
    B, T, S, D = x.shape
    BS = B * T
    H = LSTM_HIDDEN
    half = S // 2
    x2 = x.reshape(BS, S, D)
    ctx = jnp.einsum('cs,bsd->bcd', p['w_ctx'], x2) + p['b_ctx'][None, :, None]
    ctx = jnp.max(ctx, axis=1)
    p1 = jnp.einsum('cs,bsd->bcd', p['w_cos'], x2[:, :half]) + p['b_cos'][None, :, None]
    p2 = jnp.einsum('cs,bsd->bcd', p['w_cos'], x2[:, half:]) + p['b_cos'][None, :, None]
    sim = jnp.sum(p1 * p2, -1) / jnp.maximum(
        jnp.linalg.norm(p1, axis=-1) * jnp.linalg.norm(p2, axis=-1), 1e-8)
    seq = jnp.concatenate([ctx, sim], axis=1).reshape(B, T, -1)

    def run_dir(seq, wih, whh, b, reverse):
        xs = seq[:, ::-1] if reverse else seq
        def step(carry, xt):
            h, c = carry
            g = xt @ wih + h @ whh + b
            i = jax.nn.sigmoid(g[:, :H]); f = jax.nn.sigmoid(g[:, H:2 * H])
            gg = jnp.tanh(g[:, 2 * H:3 * H]); o = jax.nn.sigmoid(g[:, 3 * H:])
            c = f * c + i * gg
            h = o * jnp.tanh(c)
            return (h, c), h
        h0 = jnp.zeros((B, H), jnp.float32)
        _, hs = lax.scan(step, (h0, h0), jnp.transpose(xs, (1, 0, 2)))
        hs = jnp.transpose(hs, (1, 0, 2))
        return hs[:, ::-1] if reverse else hs

    hf = run_dir(seq, p['w_ih_f'], p['w_hh_f'], p['b_f'][0], False)
    hr = run_dir(seq, p['w_ih_r'], p['w_hh_r'], p['b_r'][0], True)
    out = jnp.concatenate([hf, hr], -1).reshape(BS, 2 * H)
    h1 = jnp.maximum(out @ p['w1'] + p['b1'][0], 0.0)
    return h1 @ p['w2'] + p['b2'][0]


if __name__ == "__main__":
    # TODO(synk): self.lstm.flatten_parameters() is a CUDA weight-layout no-op; nothing to port.
    key = jax.random.PRNGKey(0)
    kx, kparam = jax.random.split(key)
    x = jax.random.normal(kx, (BATCH, SEQ_LEN, SHOT_NUM, PLACE_FEAT_DIM), jnp.float32)
    params = init_params(kparam)
    kernel_params = pack_params(params)

    out = lgss_one_forward(x, kernel_params)
    out = jax.block_until_ready(out)

    ref = reference_forward(x, params)
    assert out.shape == (BATCH * SEQ_LEN, 2), out.shape
    assert jnp.all(jnp.isfinite(out))
    assert jnp.allclose(out, ref, rtol=1e-3, atol=1e-3)
    print("KERNEL_OK")
</pallas_src>

<mosaic_0001>
module attributes {stable_mosaic.version = 11 : i64} {
  func.func @kernel(%arg0: memref<8x64xf32, #tpu.memory_space<vmem>>, %arg1: memref<64x128xf32, #tpu.memory_space<vmem>>, %arg2: memref<1x128xf32, #tpu.memory_space<vmem>>, %arg3: memref<64x128xf32, #tpu.memory_space<vmem>>, %arg4: memref<64x128xf32, #tpu.memory_space<vmem>>, %arg5: memref<1x128xf32, #tpu.memory_space<vmem>>, %arg6: memref<128x8xf32, #tpu.memory_space<vmem>>, %arg7: memref<16x256xf32, #tpu.memory_space<vmem>>, %arg8: memref<8x256xf32, #tpu.memory_space<vmem>>, %arg9: memref<64x256xf32, #tpu.memory_space<vmem>>, %arg10: memref<1x128xf32, #tpu.memory_space<vmem>>, %arg11: memref<1x128xf32, #tpu.memory_space<vmem>>, %arg12: memref<64x128xf32, #tpu.memory_space<vmem>>, %arg13: memref<1x128xf32, #tpu.memory_space<vmem>>, %arg14: memref<128x2xf32, #tpu.memory_space<vmem>>, %arg15: memref<1x2xf32, #tpu.memory_space<vmem>>, %arg16: memref<8x2xf32, #tpu.memory_space<vmem>>, %arg17: memref<8x64xf32, #tpu.memory_space<vmem>>) attributes {dimension_semantics = [], scalar_prefetch = 0 : i64, scratch_operands = 1 : i64, tpu.core_type = #tpu.core_type<tc>} {
    %c0 = arith.constant 0 : index
    %c0_0 = arith.constant 0 : index
    %0 = vector.load %arg0[%c0, %c0_0] : memref<8x64xf32, #tpu.memory_space<vmem>>, vector<8x64xf32>
    %c0_1 = arith.constant 0 : index
    %c0_2 = arith.constant 0 : index
    %1 = vector.load %arg1[%c0_1, %c0_2] : memref<64x128xf32, #tpu.memory_space<vmem>>, vector<64x128xf32>
    %cst = arith.constant dense<0.000000e+00> : vector<8x128xf32>
    %2 = tpu.matmul %0, %1, %cst {dimension_numbers = #tpu.dot_dimension_numbers<[1], [0], [0], [1], [0, 0, 1, 1], [], []>} : vector<8x64xf32>, vector<64x128xf32>, vector<8x128xf32> -> vector<8x128xf32>
    %c0_3 = arith.constant 0 : index
    %c0_4 = arith.constant 0 : index
    %3 = vector.load %arg2[%c0_3, %c0_4] : memref<1x128xf32, #tpu.memory_space<vmem>>, vector<1x128xf32>
    %4 = vector.broadcast %3 : vector<1x128xf32> to vector<8x128xf32>
    %5 = arith.addf %2, %4 : vector<8x128xf32>
    %6 = vector.extract_strided_slice %5 {offsets = [0, 0], sizes = [8, 16], strides = [1, 1]} : vector<8x128xf32> to vector<8x16xf32>
    %7 = vector.extract_strided_slice %5 {offsets = [0, 16], sizes = [8, 16], strides = [1, 1]} : vector<8x128xf32> to vector<8x16xf32>
    %8 = arith.maximumf %6, %7 : vector<8x16xf32>
    %9 = vector.extract_strided_slice %5 {offsets = [0, 32], sizes = [8, 16], strides = [1, 1]} : vector<8x128xf32> to vector<8x16xf32>
    %10 = arith.maximumf %8, %9 : vector<8x16xf32>
    %11 = vector.extract_strided_slice %5 {offsets = [0, 48], sizes = [8, 16], strides = [1, 1]} : vector<8x128xf32> to vector<8x16xf32>
    %12 = arith.maximumf %10, %11 : vector<8x16xf32>
    %13 = vector.extract_strided_slice %5 {offsets = [0, 64], sizes = [8, 16], strides = [1, 1]} : vector<8x128xf32> to vector<8x16xf32>
    %14 = arith.maximumf %12, %13 : vector<8x16xf32>
    %15 = vector.extract_strided_slice %5 {offsets = [0, 80], sizes = [8, 16], strides = [1, 1]} : vector<8x128xf32> to vector<8x16xf32>
    %16 = arith.maximumf %14, %15 : vector<8x16xf32>
    %17 = vector.extract_strided_slice %5 {offsets = [0, 96], sizes = [8, 16], strides = [1, 1]} : vector<8x128xf32> to vector<8x16xf32>
    %18 = arith.maximumf %16, %17 : vector<8x16xf32>
    %19 = vector.extract_strided_slice %5 {offsets = [0, 112], sizes = [8, 16], strides = [1, 1]} : vector<8x128xf32> to vector<8x16xf32>
    %20 = arith.maximumf %18, %19 : vector<8x16xf32>
    %c0_5 = arith.constant 0 : index
    %c0_6 = arith.constant 0 : index
    %21 = vector.load %arg3[%c0_5, %c0_6] : memref<64x128xf32, #tpu.memory_space<vmem>>, vector<64x128xf32>
    %cst_7 = arith.constant dense<0.000000e+00> : vector<8x128xf32>
    %22 = tpu.matmul %0, %21, %cst_7 {dimension_numbers = #tpu.dot_dimension_numbers<[1], [0], [0], [1], [0, 0, 1, 1], [], []>} : vector<8x64xf32>, vector<64x128xf32>, vector<8x128xf32> -> vector<8x128xf32>
    %c0_8 = arith.constant 0 : index
    %c0_9 = arith.constant 0 : index
    %23 = vector.load %arg5[%c0_8, %c0_9] : memref<1x128xf32, #tpu.memory_space<vmem>>, vector<1x128xf32>
    %24 = vector.broadcast %23 : vector<1x128xf32> to vector<8x128xf32>
    %25 = arith.addf %22, %24 : vector<8x128xf32>
    %c0_10 = arith.constant 0 : index
    %c0_11 = arith.constant 0 : index
    %26 = vector.load %arg4[%c0_10, %c0_11] : memref<64x128xf32, #tpu.memory_space<vmem>>, vector<64x128xf32>
    %cst_12 = arith.constant dense<0.000000e+00> : vector<8x128xf32>
    %27 = tpu.matmul %0, %26, %cst_12 {dimension_numbers = #tpu.dot_dimension_numbers<[1], [0], [0], [1], [0, 0, 1, 1], [], []>} : vector<8x64xf32>, vector<64x128xf32>, vector<8x128xf32> -> vector<8x128xf32>
    %c0_13 = arith.constant 0 : index
    %c0_14 = arith.constant 0 : index
    %28 = vector.load %arg5[%c0_13, %c0_14] : memref<1x128xf32, #tpu.memory_space<vmem>>, vector<1x128xf32>
    %29 = vector.broadcast %28 : vector<1x128xf32> to vector<8x128xf32>
    %30 = arith.addf %27, %29 : vector<8x128xf32>
    %c0_15 = arith.constant 0 : index
    %c0_16 = arith.constant 0 : index
    %31 = vector.load %arg6[%c0_15, %c0_16] : memref<128x8xf32, #tpu.memory_space<vmem>>, vector<128x8xf32>
    %32 = arith.mulf %25, %30 : vector<8x128xf32>
    %cst_17 = arith.constant dense<0.000000e+00> : vector<8x8xf32>
    %33 = tpu.matmul %32, %31, %cst_17 {dimension_numbers = #tpu.dot_dimension_numbers<[1], [0], [0], [1], [0, 0, 1, 1], [], []>} : vector<8x128xf32>, vector<128x8xf32>, vector<8x8xf32> -> vector<8x8xf32>
    %34 = arith.mulf %25, %25 : vector<8x128xf32>
    %cst_18 = arith.constant dense<0.000000e+00> : vector<8x8xf32>
    %35 = tpu.matmul %34, %31, %cst_18 {dimension_numbers = #tpu.dot_dimension_numbers<[1], [0], [0], [1], [0, 0, 1, 1], [], []>} : vector<8x128xf32>, vector<128x8xf32>, vector<8x8xf32> -> vector<8x8xf32>
    %36 = arith.mulf %30, %30 : vector<8x128xf32>
    %cst_19 = arith.constant dense<0.000000e+00> : vector<8x8xf32>
    %37 = tpu.matmul %36, %31, %cst_19 {dimension_numbers = #tpu.dot_dimension_numbers<[1], [0], [0], [1], [0, 0, 1, 1], [], []>} : vector<8x128xf32>, vector<128x8xf32>, vector<8x8xf32> -> vector<8x8xf32>
    %38 = arith.mulf %35, %37 : vector<8x8xf32>
    %cst_20 = arith.constant 1.000000e-16 : f32
    %39 = vector.broadcast %cst_20 : f32 to vector<8x8xf32>
    %40 = arith.maximumf %38, %39 : vector<8x8xf32>
    %41 = math.rsqrt %40 : vector<8x8xf32>
    %42 = arith.mulf %33, %41 : vector<8x8xf32>
    %c0_21 = arith.constant 0 : index
    %c0_22 = arith.constant 0 : index
    %43 = vector.load %arg7[%c0_21, %c0_22] : memref<16x256xf32, #tpu.memory_space<vmem>>, vector<16x256xf32>
    %cst_23 = arith.constant dense<0.000000e+00> : vector<8x256xf32>
    %44 = tpu.matmul %20, %43, %cst_23 {dimension_numbers = #tpu.dot_dimension_numbers<[1], [0], [0], [1], [0, 0, 1, 1], [], []>} : vector<8x16xf32>, vector<16x256xf32>, vector<8x256xf32> -> vector<8x256xf32>
    %c0_24 = arith.constant 0 : index
    %c0_25 = arith.constant 0 : index
    %45 = vector.load %arg8[%c0_24, %c0_25] : memref<8x256xf32, #tpu.memory_space<vmem>>, vector<8x256xf32>
    %cst_26 = arith.constant dense<0.000000e+00> : vector<8x256xf32>
    %46 = tpu.matmul %42, %45, %cst_26 {dimension_numbers = #tpu.dot_dimension_numbers<[1], [0], [0], [1], [0, 0, 1, 1], [], []>} : vector<8x8xf32>, vector<8x256xf32>, vector<8x256xf32> -> vector<8x256xf32>
    %47 = arith.addf %44, %46 : vector<8x256xf32>
    %c0_27 = arith.constant 0 : index
    %c0_28 = arith.constant 0 : index
    %48 = vector.load %arg9[%c0_27, %c0_28] : memref<64x256xf32, #tpu.memory_space<vmem>>, vector<64x256xf32>
    %c0_29 = arith.constant 0 : index
    %c0_30 = arith.constant 0 : index
    %49 = vector.load %arg10[%c0_29, %c0_30] : memref<1x128xf32, #tpu.memory_space<vmem>>, vector<1x128xf32>
    %c0_31 = arith.constant 0 : index
    %c0_32 = arith.constant 0 : index
    %50 = vector.load %arg11[%c0_31, %c0_32] : memref<1x128xf32, #tpu.memory_space<vmem>>, vector<1x128xf32>
    %cst_33 = arith.constant 0.000000e+00 : f32
    %51 = vector.broadcast %cst_33 : f32 to vector<2x32xf32>
    %cst_34 = arith.constant 0.000000e+00 : f32
    %52 = vector.broadcast %cst_34 : f32 to vector<2x32xf32>
    %cst_35 = arith.constant 0.000000e+00 : f32
    %53 = vector.broadcast %cst_35 : f32 to vector<2x32xf32>
    %cst_36 = arith.constant 0.000000e+00 : f32
    %54 = vector.broadcast %cst_36 : f32 to vector<2x32xf32>
    %55 = tpu.concatenate %51, %53 in 1 : vector<2x32xf32>, vector<2x32xf32> -> vector<2x64xf32>
    %cst_37 = arith.constant dense<0.000000e+00> : vector<2x256xf32>
    %56 = tpu.matmul %55, %48, %cst_37 {dimension_numbers = #tpu.dot_dimension_numbers<[1], [0], [0], [1], [0, 0, 1, 1], [], []>} : vector<2x64xf32>, vector<64x256xf32>, vector<2x256xf32> -> vector<2x256xf32>
    %57 = vector.extract_strided_slice %47 {offsets = [0, 0], sizes = [2, 128], strides = [1, 1]} : vector<8x256xf32> to vector<2x128xf32>
    %58 = vector.extract_strided_slice %56 {offsets = [0, 0], sizes = [2, 128], strides = [1, 1]} : vector<2x256xf32> to vector<2x128xf32>
    %59 = arith.addf %57, %58 : vector<2x128xf32>
    %60 = vector.broadcast %49 : vector<1x128xf32> to vector<2x128xf32>
    %61 = arith.addf %59, %60 : vector<2x128xf32>
    %62 = vector.extract_strided_slice %47 {offsets = [6, 128], sizes = [2, 128], strides = [1, 1]} : vector<8x256xf32> to vector<2x128xf32>
    %63 = vector.extract_strided_slice %56 {offsets = [0, 128], sizes = [2, 128], strides = [1, 1]} : vector<2x256xf32> to vector<2x128xf32>
    %64 = arith.addf %62, %63 : vector<2x128xf32>
    %65 = vector.broadcast %50 : vector<1x128xf32> to vector<2x128xf32>
    %66 = arith.addf %64, %65 : vector<2x128xf32>
    %67 = vector.extract_strided_slice %61 {offsets = [0, 0], sizes = [2, 32], strides = [1, 1]} : vector<2x128xf32> to vector<2x32xf32>
    %68 = arith.negf %67 : vector<2x32xf32>
    %69 = math.exp %68 : vector<2x32xf32>
    %cst_38 = arith.constant 1.000000e+00 : f32
    %70 = vector.broadcast %cst_38 : f32 to vector<2x32xf32>
    %71 = arith.addf %70, %69 : vector<2x32xf32>
    %72 = arith.divf %70, %71 : vector<2x32xf32>
    %73 = vector.extract_strided_slice %61 {offsets = [0, 32], sizes = [2, 32], strides = [1, 1]} : vector<2x128xf32> to vector<2x32xf32>
    %74 = arith.negf %73 : vector<2x32xf32>
    %75 = math.exp %74 : vector<2x32xf32>
    %cst_39 = arith.constant 1.000000e+00 : f32
    %76 = vector.broadcast %cst_39 : f32 to vector<2x32xf32>
    %77 = arith.addf %76, %75 : vector<2x32xf32>
    %78 = arith.divf %76, %77 : vector<2x32xf32>
    %79 = vector.extract_strided_slice %61 {offsets = [0, 64], sizes = [2, 32], strides = [1, 1]} : vector<2x128xf32> to vector<2x32xf32>
    %80 = math.tanh %79 : vector<2x32xf32>
    %81 = vector.extract_strided_slice %61 {offsets = [0, 96], sizes = [2, 32], strides = [1, 1]} : vector<2x128xf32> to vector<2x32xf32>
    %82 = arith.negf %81 : vector<2x32xf32>
    %83 = math.exp %82 : vector<2x32xf32>
    %cst_40 = arith.constant 1.000000e+00 : f32
    %84 = vector.broadcast %cst_40 : f32 to vector<2x32xf32>
    %85 = arith.addf %84, %83 : vector<2x32xf32>
    %86 = arith.divf %84, %85 : vector<2x32xf32>
    %87 = arith.mulf %78, %52 : vector<2x32xf32>
    %88 = arith.mulf %72, %80 : vector<2x32xf32>
    %89 = arith.addf %87, %88 : vector<2x32xf32>
    %90 = math.tanh %89 : vector<2x32xf32>
    %91 = arith.mulf %86, %90 : vector<2x32xf32>
    %92 = vector.extract_strided_slice %66 {offsets = [0, 0], sizes = [2, 32], strides = [1, 1]} : vector<2x128xf32> to vector<2x32xf32>
    %93 = arith.negf %92 : vector<2x32xf32>
    %94 = math.exp %93 : vector<2x32xf32>
    %cst_41 = arith.constant 1.000000e+00 : f32
    %95 = vector.broadcast %cst_41 : f32 to vector<2x32xf32>
    %96 = arith.addf %95, %94 : vector<2x32xf32>
    %97 = arith.divf %95, %96 : vector<2x32xf32>
    %98 = vector.extract_strided_slice %66 {offsets = [0, 32], sizes = [2, 32], strides = [1, 1]} : vector<2x128xf32> to vector<2x32xf32>
    %99 = arith.negf %98 : vector<2x32xf32>
    %100 = math.exp %99 : vector<2x32xf32>
    %cst_42 = arith.constant 1.000000e+00 : f32
    %101 = vector.broadcast %cst_42 : f32 to vector<2x32xf32>
    %102 = arith.addf %101, %100 : vector<2x32xf32>
    %103 = arith.divf %101, %102 : vector<2x32xf32>
    %104 = vector.extract_strided_slice %66 {offsets = [0, 64], sizes = [2, 32], strides = [1, 1]} : vector<2x128xf32> to vector<2x32xf32>
    %105 = math.tanh %104 : vector<2x32xf32>
    %106 = vector.extract_strided_slice %66 {offsets = [0, 96], sizes = [2, 32], strides = [1, 1]} : vector<2x128xf32> to vector<2x32xf32>
    %107 = arith.negf %106 : vector<2x32xf32>
    %108 = math.exp %107 : vector<2x32xf32>
    %cst_43 = arith.constant 1.000000e+00 : f32
    %109 = vector.broadcast %cst_43 : f32 to vector<2x32xf32>
    %110 = arith.addf %109, %108 : vector<2x32xf32>
    %111 = arith.divf %109, %110 : vector<2x32xf32>
    %112 = arith.mulf %103, %54 : vector<2x32xf32>
    %113 = arith.mulf %97, %105 : vector<2x32xf32>
    %114 = arith.addf %112, %113 : vector<2x32xf32>
    %115 = math.tanh %114 : vector<2x32xf32>
    %116 = arith.mulf %111, %115 : vector<2x32xf32>
    %c0_44 = arith.constant 0 : index
    %c0_45 = arith.constant 0 : index
    %117 = vector.load %arg17[%c0_44, %c0_45] : memref<8x64xf32, #tpu.memory_space<vmem>>, vector<2x32xf32>
    tpu.vector_store %arg17[%c0_44, %c0_45], %91 {strides = array<i32>} : memref<8x64xf32, #tpu.memory_space<vmem>>, vector<2x32xf32>,
    %c6 = arith.constant 6 : index
    %c32 = arith.constant 32 : index
    %118 = vector.load %arg17[%c6, %c32] : memref<8x64xf32, #tpu.memory_space<vmem>>, vector<2x32xf32>
    tpu.vector_store %arg17[%c6, %c32], %116 {strides = array<i32>} : memref<8x64xf32, #tpu.memory_space<vmem>>, vector<2x32xf32>,
    %119 = tpu.concatenate %91, %116 in 1 : vector<2x32xf32>, vector<2x32xf32> -> vector<2x64xf32>
    %cst_46 = arith.constant dense<0.000000e+00> : vector<2x256xf32>
    %120 = tpu.matmul %119, %48, %cst_46 {dimension_numbers = #tpu.dot_dimension_numbers<[1], [0], [0], [1], [0, 0, 1, 1], [], []>} : vector<2x64xf32>, vector<64x256xf32>, vector<2x256xf32> -> vector<2x256xf32>
    %121 = vector.extract_strided_slice %47 {offsets = [2, 0], sizes = [2, 128], strides = [1, 1]} : vector<8x256xf32> to vector<2x128xf32>
    %122 = vector.extract_strided_slice %120 {offsets = [0, 0], sizes = [2, 128], strides = [1, 1]} : vector<2x256xf32> to vector<2x128xf32>
    %123 = arith.addf %121, %122 : vector<2x128xf32>
    %124 = vector.broadcast %49 : vector<1x128xf32> to vector<2x128xf32>
    %125 = arith.addf %123, %124 : vector<2x128xf32>
    %126 = vector.extract_strided_slice %47 {offsets = [4, 128], sizes = [2, 128], strides = [1, 1]} : vector<8x256xf32> to vector<2x128xf32>
    %127 = vector.extract_strided_slice %120 {offsets = [0, 128], sizes = [2, 128], strides = [1, 1]} : vector<2x256xf32> to vector<2x128xf32>
    %128 = arith.addf %126, %127 : vector<2x128xf32>
    %129 = vector.broadcast %50 : vector<1x128xf32> to vector<2x128xf32>
    %130 = arith.addf %128, %129 : vector<2x128xf32>
    %131 = vector.extract_strided_slice %125 {offsets = [0, 0], sizes = [2, 32], strides = [1, 1]} : vector<2x128xf32> to vector<2x32xf32>
    %132 = arith.negf %131 : vector<2x32xf32>
    %133 = math.exp %132 : vector<2x32xf32>
    %cst_47 = arith.constant 1.000000e+00 : f32
    %134 = vector.broadcast %cst_47 : f32 to vector<2x32xf32>
    %135 = arith.addf %134, %133 : vector<2x32xf32>
    %136 = arith.divf %134, %135 : vector<2x32xf32>
    %137 = vector.extract_strided_slice %125 {offsets = [0, 32], sizes = [2, 32], strides = [1, 1]} : vector<2x128xf32> to vector<2x32xf32>
    %138 = arith.negf %137 : vector<2x32xf32>
    %139 = math.exp %138 : vector<2x32xf32>
    %cst_48 = arith.constant 1.000000e+00 : f32
    %140 = vector.broadcast %cst_48 : f32 to vector<2x32xf32>
    %141 = arith.addf %140, %139 : vector<2x32xf32>
    %142 = arith.divf %140, %141 : vector<2x32xf32>
    %143 = vector.extract_strided_slice %125 {offsets = [0, 64], sizes = [2, 32], strides = [1, 1]} : vector<2x128xf32> to vector<2x32xf32>
    %144 = math.tanh %143 : vector<2x32xf32>
    %145 = vector.extract_strided_slice %125 {offsets = [0, 96], sizes = [2, 32], strides = [1, 1]} : vector<2x128xf32> to vector<2x32xf32>
    %146 = arith.negf %145 : vector<2x32xf32>
    %147 = math.exp %146 : vector<2x32xf32>
    %cst_49 = arith.constant 1.000000e+00 : f32
    %148 = vector.broadcast %cst_49 : f32 to vector<2x32xf32>
    %149 = arith.addf %148, %147 : vector<2x32xf32>
    %150 = arith.divf %148, %149 : vector<2x32xf32>
    %151 = arith.mulf %142, %89 : vector<2x32xf32>
    %152 = arith.mulf %136, %144 : vector<2x32xf32>
    %153 = arith.addf %151, %152 : vector<2x32xf32>
    %154 = math.tanh %153 : vector<2x32xf32>
    %155 = arith.mulf %150, %154 : vector<2x32xf32>
    %156 = vector.extract_strided_slice %130 {offsets = [0, 0], sizes = [2, 32], strides = [1, 1]} : vector<2x128xf32> to vector<2x32xf32>
    %157 = arith.negf %156 : vector<2x32xf32>
    %158 = math.exp %157 : vector<2x32xf32>
    %cst_50 = arith.constant 1.000000e+00 : f32
    %159 = vector.broadcast %cst_50 : f32 to vector<2x32xf32>
    %160 = arith.addf %159, %158 : vector<2x32xf32>
    %161 = arith.divf %159, %160 : vector<2x32xf32>
    %162 = vector.extract_strided_slice %130 {offsets = [0, 32], sizes = [2, 32], strides = [1, 1]} : vector<2x128xf32> to vector<2x32xf32>
    %163 = arith.negf %162 : vector<2x32xf32>
    %164 = math.exp %163 : vector<2x32xf32>
    %cst_51 = arith.constant 1.000000e+00 : f32
    %165 = vector.broadcast %cst_51 : f32 to vector<2x32xf32>
    %166 = arith.addf %165, %164 : vector<2x32xf32>
    %167 = arith.divf %165, %166 : vector<2x32xf32>
    %168 = vector.extract_strided_slice %130 {offsets = [0, 64], sizes = [2, 32], strides = [1, 1]} : vector<2x128xf32> to vector<2x32xf32>
    %169 = math.tanh %168 : vector<2x32xf32>
    %170 = vector.extract_strided_slice %130 {offsets = [0, 96], sizes = [2, 32], strides = [1, 1]} : vector<2x128xf32> to vector<2x32xf32>
    %171 = arith.negf %170 : vector<2x32xf32>
    %172 = math.exp %171 : vector<2x32xf32>
    %cst_52 = arith.constant 1.000000e+00 : f32
    %173 = vector.broadcast %cst_52 : f32 to vector<2x32xf32>
    %174 = arith.addf %173, %172 : vector<2x32xf32>
    %175 = arith.divf %173, %174 : vector<2x32xf32>
    %176 = arith.mulf %167, %114 : vector<2x32xf32>
    %177 = arith.mulf %161, %169 : vector<2x32xf32>
    %178 = arith.addf %176, %177 : vector<2x32xf32>
    %179 = math.tanh %178 : vector<2x32xf32>
    %180 = arith.mulf %175, %179 : vector<2x32xf32>
    %c2 = arith.constant 2 : index
    %c0_53 = arith.constant 0 : index
    %181 = vector.load %arg17[%c2, %c0_53] : memref<8x64xf32, #tpu.memory_space<vmem>>, vector<2x32xf32>
    tpu.vector_store %arg17[%c2, %c0_53], %155 {strides = array<i32>} : memref<8x64xf32, #tpu.memory_space<vmem>>, vector<2x32xf32>,
    %c4 = arith.constant 4 : index
    %c32_54 = arith.constant 32 : index
    %182 = vector.load %arg17[%c4, %c32_54] : memref<8x64xf32, #tpu.memory_space<vmem>>, vector<2x32xf32>
    tpu.vector_store %arg17[%c4, %c32_54], %180 {strides = array<i32>} : memref<8x64xf32, #tpu.memory_space<vmem>>, vector<2x32xf32>,
    %183 = tpu.concatenate %155, %180 in 1 : vector<2x32xf32>, vector<2x32xf32> -> vector<2x64xf32>
    %cst_55 = arith.constant dense<0.000000e+00> : vector<2x256xf32>
    %184 = tpu.matmul %183, %48, %cst_55 {dimension_numbers = #tpu.dot_dimension_numbers<[1], [0], [0], [1], [0, 0, 1, 1], [], []>} : vector<2x64xf32>, vector<64x256xf32>, vector<2x256xf32> -> vector<2x256xf32>
    %185 = vector.extract_strided_slice %47 {offsets = [4, 0], sizes = [2, 128], strides = [1, 1]} : vector<8x256xf32> to vector<2x128xf32>
    %186 = vector.extract_strided_slice %184 {offsets = [0, 0], sizes = [2, 128], strides = [1, 1]} : vector<2x256xf32> to vector<2x128xf32>
    %187 = arith.addf %185, %186 : vector<2x128xf32>
    %188 = vector.broadcast %49 : vector<1x128xf32> to vector<2x128xf32>
    %189 = arith.addf %187, %188 : vector<2x128xf32>
    %190 = vector.extract_strided_slice %47 {offsets = [2, 128], sizes = [2, 128], strides = [1, 1]} : vector<8x256xf32> to vector<2x128xf32>
    %191 = vector.extract_strided_slice %184 {offsets = [0, 128], sizes = [2, 128], strides = [1, 1]} : vector<2x256xf32> to vector<2x128xf32>
    %192 = arith.addf %190, %191 : vector<2x128xf32>
    %193 = vector.broadcast %50 : vector<1x128xf32> to vector<2x128xf32>
    %194 = arith.addf %192, %193 : vector<2x128xf32>
    %195 = vector.extract_strided_slice %189 {offsets = [0, 0], sizes = [2, 32], strides = [1, 1]} : vector<2x128xf32> to vector<2x32xf32>
    %196 = arith.negf %195 : vector<2x32xf32>
    %197 = math.exp %196 : vector<2x32xf32>
    %cst_56 = arith.constant 1.000000e+00 : f32
    %198 = vector.broadcast %cst_56 : f32 to vector<2x32xf32>
    %199 = arith.addf %198, %197 : vector<2x32xf32>
    %200 = arith.divf %198, %199 : vector<2x32xf32>
    %201 = vector.extract_strided_slice %189 {offsets = [0, 32], sizes = [2, 32], strides = [1, 1]} : vector<2x128xf32> to vector<2x32xf32>
    %202 = arith.negf %201 : vector<2x32xf32>
    %203 = math.exp %202 : vector<2x32xf32>
    %cst_57 = arith.constant 1.000000e+00 : f32
    %204 = vector.broadcast %cst_57 : f32 to vector<2x32xf32>
    %205 = arith.addf %204, %203 : vector<2x32xf32>
    %206 = arith.divf %204, %205 : vector<2x32xf32>
    %207 = vector.extract_strided_slice %189 {offsets = [0, 64], sizes = [2, 32], strides = [1, 1]} : vector<2x128xf32> to vector<2x32xf32>
    %208 = math.tanh %207 : vector<2x32xf32>
    %209 = vector.extract_strided_slice %189 {offsets = [0, 96], sizes = [2, 32], strides = [1, 1]} : vector<2x128xf32> to vector<2x32xf32>
    %210 = arith.negf %209 : vector<2x32xf32>
    %211 = math.exp %210 : vector<2x32xf32>
    %cst_58 = arith.constant 1.000000e+00 : f32
    %212 = vector.broadcast %cst_58 : f32 to vector<2x32xf32>
    %213 = arith.addf %212, %211 : vector<2x32xf32>
    %214 = arith.divf %212, %213 : vector<2x32xf32>
    %215 = arith.mulf %206, %153 : vector<2x32xf32>
    %216 = arith.mulf %200, %208 : vector<2x32xf32>
    %217 = arith.addf %215, %216 : vector<2x32xf32>
    %218 = math.tanh %217 : vector<2x32xf32>
    %219 = arith.mulf %214, %218 : vector<2x32xf32>
    %220 = vector.extract_strided_slice %194 {offsets = [0, 0], sizes = [2, 32], strides = [1, 1]} : vector<2x128xf32> to vector<2x32xf32>
    %221 = arith.negf %220 : vector<2x32xf32>
    %222 = math.exp %221 : vector<2x32xf32>
    %cst_59 = arith.constant 1.000000e+00 : f32
    %223 = vector.broadcast %cst_59 : f32 to vector<2x32xf32>
    %224 = arith.addf %223, %222 : vector<2x32xf32>
    %225 = arith.divf %223, %224 : vector<2x32xf32>
    %226 = vector.extract_strided_slice %194 {offsets = [0, 32], sizes = [2, 32], strides = [1, 1]} : vector<2x128xf32> to vector<2x32xf32>
    %227 = arith.negf %226 : vector<2x32xf32>
    %228 = math.exp %227 : vector<2x32xf32>
    %cst_60 = arith.constant 1.000000e+00 : f32
    %229 = vector.broadcast %cst_60 : f32 to vector<2x32xf32>
    %230 = arith.addf %229, %228 : vector<2x32xf32>
    %231 = arith.divf %229, %230 : vector<2x32xf32>
    %232 = vector.extract_strided_slice %194 {offsets = [0, 64], sizes = [2, 32], strides = [1, 1]} : vector<2x128xf32> to vector<2x32xf32>
    %233 = math.tanh %232 : vector<2x32xf32>
    %234 = vector.extract_strided_slice %194 {offsets = [0, 96], sizes = [2, 32], strides = [1, 1]} : vector<2x128xf32> to vector<2x32xf32>
    %235 = arith.negf %234 : vector<2x32xf32>
    %236 = math.exp %235 : vector<2x32xf32>
    %cst_61 = arith.constant 1.000000e+00 : f32
    %237 = vector.broadcast %cst_61 : f32 to vector<2x32xf32>
    %238 = arith.addf %237, %236 : vector<2x32xf32>
    %239 = arith.divf %237, %238 : vector<2x32xf32>
    %240 = arith.mulf %231, %178 : vector<2x32xf32>
    %241 = arith.mulf %225, %233 : vector<2x32xf32>
    %242 = arith.addf %240, %241 : vector<2x32xf32>
    %243 = math.tanh %242 : vector<2x32xf32>
    %244 = arith.mulf %239, %243 : vector<2x32xf32>
    %c4_62 = arith.constant 4 : index
    %c0_63 = arith.constant 0 : index
    %245 = vector.load %arg17[%c4_62, %c0_63] : memref<8x64xf32, #tpu.memory_space<vmem>>, vector<2x32xf32>
    tpu.vector_store %arg17[%c4_62, %c0_63], %219 {strides = array<i32>} : memref<8x64xf32, #tpu.memory_space<vmem>>, vector<2x32xf32>,
    %c2_64 = arith.constant 2 : index
    %c32_65 = arith.constant 32 : index
    %246 = vector.load %arg17[%c2_64, %c32_65] : memref<8x64xf32, #tpu.memory_space<vmem>>, vector<2x32xf32>
    tpu.vector_store %arg17[%c2_64, %c32_65], %244 {strides = array<i32>} : memref<8x64xf32, #tpu.memory_space<vmem>>, vector<2x32xf32>,
    %247 = tpu.concatenate %219, %244 in 1 : vector<2x32xf32>, vector<2x32xf32> -> vector<2x64xf32>
    %cst_66 = arith.constant dense<0.000000e+00> : vector<2x256xf32>
    %248 = tpu.matmul %247, %48, %cst_66 {dimension_numbers = #tpu.dot_dimension_numbers<[1], [0], [0], [1], [0, 0, 1, 1], [], []>} : vector<2x64xf32>, vector<64x256xf32>, vector<2x256xf32> -> vector<2x256xf32>
    %249 = vector.extract_strided_slice %47 {offsets = [6, 0], sizes = [2, 128], strides = [1, 1]} : vector<8x256xf32> to vector<2x128xf32>
    %250 = vector.extract_strided_slice %248 {offsets = [0, 0], sizes = [2, 128], strides = [1, 1]} : vector<2x256xf32> to vector<2x128xf32>
    %251 = arith.addf %249, %250 : vector<2x128xf32>
    %252 = vector.broadcast %49 : vector<1x128xf32> to vector<2x128xf32>
    %253 = arith.addf %251, %252 : vector<2x128xf32>
    %254 = vector.extract_strided_slice %47 {offsets = [0, 128], sizes = [2, 128], strides = [1, 1]} : vector<8x256xf32> to vector<2x128xf32>
    %255 = vector.extract_strided_slice %248 {offsets = [0, 128], sizes = [2, 128], strides = [1, 1]} : vector<2x256xf32> to vector<2x128xf32>
    %256 = arith.addf %254, %255 : vector<2x128xf32>
    %257 = vector.broadcast %50 : vector<1x128xf32> to vector<2x128xf32>
    %258 = arith.addf %256, %257 : vector<2x128xf32>
    %259 = vector.extract_strided_slice %253 {offsets = [0, 0], sizes = [2, 32], strides = [1, 1]} : vector<2x128xf32> to vector<2x32xf32>
    %260 = arith.negf %259 : vector<2x32xf32>
    %261 = math.exp %260 : vector<2x32xf32>
    %cst_67 = arith.constant 1.000000e+00 : f32
    %262 = vector.broadcast %cst_67 : f32 to vector<2x32xf32>
    %263 = arith.addf %262, %261 : vector<2x32xf32>
    %264 = arith.divf %262, %263 : vector<2x32xf32>
    %265 = vector.extract_strided_slice %253 {offsets = [0, 32], sizes = [2, 32], strides = [1, 1]} : vector<2x128xf32> to vector<2x32xf32>
    %266 = arith.negf %265 : vector<2x32xf32>
    %267 = math.exp %266 : vector<2x32xf32>
    %cst_68 = arith.constant 1.000000e+00 : f32
    %268 = vector.broadcast %cst_68 : f32 to vector<2x32xf32>
    %269 = arith.addf %268, %267 : vector<2x32xf32>
    %270 = arith.divf %268, %269 : vector<2x32xf32>
    %271 = vector.extract_strided_slice %253 {offsets = [0, 64], sizes = [2, 32], strides = [1, 1]} : vector<2x128xf32> to vector<2x32xf32>
    %272 = math.tanh %271 : vector<2x32xf32>
    %273 = vector.extract_strided_slice %253 {offsets = [0, 96], sizes = [2, 32], strides = [1, 1]} : vector<2x128xf32> to vector<2x32xf32>
    %274 = arith.negf %273 : vector<2x32xf32>
    %275 = math.exp %274 : vector<2x32xf32>
    %cst_69 = arith.constant 1.000000e+00 : f32
    %276 = vector.broadcast %cst_69 : f32 to vector<2x32xf32>
    %277 = arith.addf %276, %275 : vector<2x32xf32>
    %278 = arith.divf %276, %277 : vector<2x32xf32>
    %279 = arith.mulf %270, %217 : vector<2x32xf32>
    %280 = arith.mulf %264, %272 : vector<2x32xf32>
    %281 = arith.addf %279, %280 : vector<2x32xf32>
    %282 = math.tanh %281 : vector<2x32xf32>
    %283 = arith.mulf %278, %282 : vector<2x32xf32>
    %284 = vector.extract_strided_slice %258 {offsets = [0, 0], sizes = [2, 32], strides = [1, 1]} : vector<2x128xf32> to vector<2x32xf32>
    %285 = arith.negf %284 : vector<2x32xf32>
    %286 = math.exp %285 : vector<2x32xf32>
    %cst_70 = arith.constant 1.000000e+00 : f32
    %287 = vector.broadcast %cst_70 : f32 to vector<2x32xf32>
    %288 = arith.addf %287, %286 : vector<2x32xf32>
    %289 = arith.divf %287, %288 : vector<2x32xf32>
    %290 = vector.extract_strided_slice %258 {offsets = [0, 32], sizes = [2, 32], strides = [1, 1]} : vector<2x128xf32> to vector<2x32xf32>
    %291 = arith.negf %290 : vector<2x32xf32>
    %292 = math.exp %291 : vector<2x32xf32>
    %cst_71 = arith.constant 1.000000e+00 : f32
    %293 = vector.broadcast %cst_71 : f32 to vector<2x32xf32>
    %294 = arith.addf %293, %292 : vector<2x32xf32>
    %295 = arith.divf %293, %294 : vector<2x32xf32>
    %296 = vector.extract_strided_slice %258 {offsets = [0, 64], sizes = [2, 32], strides = [1, 1]} : vector<2x128xf32> to vector<2x32xf32>
    %297 = math.tanh %296 : vector<2x32xf32>
    %298 = vector.extract_strided_slice %258 {offsets = [0, 96], sizes = [2, 32], strides = [1, 1]} : vector<2x128xf32> to vector<2x32xf32>
    %299 = arith.negf %298 : vector<2x32xf32>
    %300 = math.exp %299 : vector<2x32xf32>
    %cst_72 = arith.constant 1.000000e+00 : f32
    %301 = vector.broadcast %cst_72 : f32 to vector<2x32xf32>
    %302 = arith.addf %301, %300 : vector<2x32xf32>
    %303 = arith.divf %301, %302 : vector<2x32xf32>
    %304 = arith.mulf %295, %242 : vector<2x32xf32>
    %305 = arith.mulf %289, %297 : vector<2x32xf32>
    %306 = arith.addf %304, %305 : vector<2x32xf32>
    %307 = math.tanh %306 : vector<2x32xf32>
    %308 = arith.mulf %303, %307 : vector<2x32xf32>
    %c6_73 = arith.constant 6 : index
    %c0_74 = arith.constant 0 : index
    %309 = vector.load %arg17[%c6_73, %c0_74] : memref<8x64xf32, #tpu.memory_space<vmem>>, vector<2x32xf32>
    tpu.vector_store %arg17[%c6_73, %c0_74], %283 {strides = array<i32>} : memref<8x64xf32, #tpu.memory_space<vmem>>, vector<2x32xf32>,
    %c0_75 = arith.constant 0 : index
    %c32_76 = arith.constant 32 : index
    %310 = vector.load %arg17[%c0_75, %c32_76] : memref<8x64xf32, #tpu.memory_space<vmem>>, vector<2x32xf32>
    tpu.vector_store %arg17[%c0_75, %c32_76], %308 {strides = array<i32>} : memref<8x64xf32, #tpu.memory_space<vmem>>, vector<2x32xf32>,
    %c0_77 = arith.constant 0 : index
    %c0_78 = arith.constant 0 : index
    %311 = vector.load %arg17[%c0_77, %c0_78] : memref<8x64xf32, #tpu.memory_space<vmem>>, vector<8x64xf32>
    %c0_79 = arith.constant 0 : index
    %c0_80 = arith.constant 0 : index
    %312 = vector.load %arg12[%c0_79, %c0_80] : memref<64x128xf32, #tpu.memory_space<vmem>>, vector<64x128xf32>
    %cst_81 = arith.constant dense<0.000000e+00> : vector<8x128xf32>
    %313 = tpu.matmul %311, %312, %cst_81 {dimension_numbers = #tpu.dot_dimension_numbers<[1], [0], [0], [1], [0, 0, 1, 1], [], []>} : vector<8x64xf32>, vector<64x128xf32>, vector<8x128xf32> -> vector<8x128xf32>
    %c0_82 = arith.constant 0 : index
    %c0_83 = arith.constant 0 : index
    %314 = vector.load %arg13[%c0_82, %c0_83] : memref<1x128xf32, #tpu.memory_space<vmem>>, vector<1x128xf32>
    %315 = vector.broadcast %314 : vector<1x128xf32> to vector<8x128xf32>
    %316 = arith.addf %313, %315 : vector<8x128xf32>
    %cst_84 = arith.constant 0.000000e+00 : f32
    %317 = vector.broadcast %cst_84 : f32 to vector<8x128xf32>
    %318 = arith.maximumf %316, %317 : vector<8x128xf32>
    %c0_85 = arith.constant 0 : index
    %c0_86 = arith.constant 0 : index
    %319 = vector.load %arg14[%c0_85, %c0_86] : memref<128x2xf32, #tpu.memory_space<vmem>>, vector<128x2xf32>
    %cst_87 = arith.constant dense<0.000000e+00> : vector<8x2xf32>
    %320 = tpu.matmul %318, %319, %cst_87 {dimension_numbers = #tpu.dot_dimension_numbers<[1], [0], [0], [1], [0, 0, 1, 1], [], []>} : vector<8x128xf32>, vector<128x2xf32>, vector<8x2xf32> -> vector<8x2xf32>
    %c0_88 = arith.constant 0 : index
    %c0_89 = arith.constant 0 : index
    %321 = vector.load %arg15[%c0_88, %c0_89] : memref<1x2xf32, #tpu.memory_space<vmem>>, vector<1x2xf32>
    %322 = vector.broadcast %321 : vector<1x2xf32> to vector<8x2xf32>
    %323 = arith.addf %320, %322 : vector<8x2xf32>
    %c0_90 = arith.constant 0 : index
    %c0_91 = arith.constant 0 : index
    %324 = vector.load %arg16[%c0_90, %c0_91] : memref<8x2xf32, #tpu.memory_space<vmem>>, vector<8x2xf32>
    tpu.vector_store %arg16[%c0_90, %c0_91], %323 {strides = array<i32>} : memref<8x2xf32, #tpu.memory_space<vmem>>, vector<8x2xf32>,
    return
  }
}

</mosaic_0001>

<bundles_post_ra>
// kernel: lgss_one_forward.1
= control target key start
LH: loop header
LB: loop body
LE: loop exit
PB: predicated region body
PF: predicated region fallthrough
CT: control target
= control target key end

     0   :  { %s1910_s0 = inlined_call_operand.vmem [shape: f32[8,64], index: 0, kind: input, shape index: {}]   ;;  %s1911_s1 = inlined_call_operand.vmem [shape: f32[64,128], index: 1, kind: input, shape index: {}]   ;;  %s1912_s2 = inlined_call_operand.vmem [shape: f32[1,128], index: 2, kind: input, shape index: {}]   ;;  %s1913_s3 = inlined_call_operand.vmem [shape: f32[64,128], index: 3, kind: input, shape index: {}]   ;;  %s1914_s4 = inlined_call_operand.vmem [shape: f32[64,128], index: 4, kind: input, shape index: {}]   ;;  %s1915_s5 = inlined_call_operand.hbm [shape: f32[1,128], index: 5, kind: input, shape index: {}]   ;;  %s1916_s6 = inlined_call_operand.vmem [shape: f32[128,8], index: 6, kind: input, shape index: {}]   ;;  %s1917_s7 = inlined_call_operand.vmem [shape: f32[16,256], index: 7, kind: input, shape index: {}]   ;;  %s1918_s8 = inlined_call_operand.vmem [shape: f32[8,256], index: 8, kind: input, shape index: {}]   ;;  %s1919_s9 = inlined_call_operand.vmem [shape: f32[64,256], index: 9, kind: input, shape index: {}]   ;;  %s1920_s10 = inlined_call_operand.hbm [shape: f32[1,128], index: 10, kind: input, shape index: {}]   ;;  %s1921_s11 = inlined_call_operand.hbm [shape: f32[1,128], index: 11, kind: input, shape index: {}]   ;;  %s1922_s12 = inlined_call_operand.hbm [shape: f32[64,128], index: 12, kind: input, shape index: {}]   ;;  %s1923_s13 = inlined_call_operand.hbm [shape: f32[1,128], index: 13, kind: input, shape index: {}]   ;;  %s1924_s14 = inlined_call_operand.vmem [shape: f32[128,2], index: 14, kind: input, shape index: {}]   ;;  %s1925_s15 = inlined_call_operand.hbm [shape: f32[1,2], index: 15, kind: input, shape index: {}]   ;;  %s1926_s16 = inlined_call_operand.vmem [shape: f32[8,2], index: 16, kind: output, shape index: {}]  }
   0x1   :  { %1927 = sst [smem:[#allocation17_spill]] %s1910_s0 }
   0x2   :  { %21 = vsyncpa [#allocation4], 0 }
   0x3   :  { %22 = vsyncpa [#allocation6], 0 }
   0x4   :  { %23 = vsyncpa [#allocation9], 0  ;;  %s59_s23 = sshll.u32 %s1920_s10, 4  ;;  %s60_s23 = int_to_ptr.hbm [resolvable:$true] %s59_s23 }
   0x5   :  { %24 = vsyncpa [#allocation12], 0  ;;  %s1408_s24 = smov [#allocation5]   ;;  %s80_s28 = sshll.u32 %s1922_s12, 4  ;;  %s81_s28 = int_to_ptr.hbm [resolvable:$true] %s80_s28 }
   0x6   :  { %s61_s25 = sshll.u32 %s1408_s24, 4  ;;  %s1409_s29 = smov [#allocation8]   ;;  %s62_s25 = int_to_ptr.vmem [resolvable:$true] %s61_s25 }
   0x7   :  { %64 = dma.hbm_to_vmem [thread:$0]  %s60_s23, 16, %s62_s25, [#allocation6]  }
   0x8   :  { %s82_s30 = sshll.u32 %s1409_s29, 4  ;;  %s1410_s0 = smov 128   ;;  %s83_s30 = int_to_ptr.vmem [resolvable:$true] %s82_s30 }
   0x9   :  { %s1411_s17 = smov 8   ;;  %s40_s10 = sshll.u32 %s1915_s5, 4  ;;  %s41_s10 = int_to_ptr.hbm [resolvable:$true] %s40_s10 }
   0xa   :  { %88 = dma.hbm_to_vmem [thread:$0]  %s81_s28, 1024, %s83_s30, [#allocation9], %s1410_s0, %s1410_s0, %s1411_s17  }
   0xb   :  { %s1412_s20 = smov [#allocation3]   ;;  %s70_s12 = sshll.u32 %s1921_s11, 4  ;;  %s71_s12 = int_to_ptr.hbm [resolvable:$true] %s70_s12 }
   0xc   :  { %s42_s21 = sshll.u32 %s1412_s20, 4  ;;  %s1413_s23 = smov [#allocation7]   ;;  %s43_s21 = int_to_ptr.vmem [resolvable:$true] %s42_s21 }
   0xd   :  { %45 = dma.hbm_to_vmem [thread:$0]  %s41_s10, 16, %s43_s21, [#allocation4]  }
   0xe   :  { %s72_s25 = sshll.u32 %s1413_s23, 4  ;;  %s94_s28 = sshll.u32 %s1923_s13, 4  ;;  %s73_s25 = int_to_ptr.vmem [resolvable:$true] %s72_s25  ;;  %s95_s28 = int_to_ptr.hbm [resolvable:$true] %s94_s28 }
   0xf   :  { %75 = dma.hbm_to_vmem [thread:$0]  %s71_s12, 16, %s73_s25, [#allocation6]  }
  0x10   :  { %s107_s30 = sshll.u32 %s1925_s15, 4  ;;  %s1414_s0 = smov [#allocation10]   ;;  %s108_s30 = int_to_ptr.hbm [resolvable:$true] %s107_s30 }
  0x11   :  { %s96_s17 = sshll.u32 %s1414_s0, 4  ;;  %s1415_s11 = smov [#allocation11]   ;;  %s97_s17 = int_to_ptr.vmem [resolvable:$true] %s96_s17 }
  0x12   :  { %99 = dma.hbm_to_vmem [thread:$0]  %s95_s28, 16, %s97_s17, [#allocation9]  }
  0x13   :  { %s109_s18 = sshll.u32 %s1415_s11, 4  ;;  %s110_s18 = int_to_ptr.vmem [resolvable:$true] %s109_s18 }
  0x14   :  { %112 = dma.hbm_to_vmem [thread:$0]  %s108_s30, 16, %s110_s18, [#allocation12]  }
  0x15   :  { %1400 = dma.done.wait [#allocation4], 16  }
  0x16   :  { %1401 = vsyncadd [#allocation4], 4294967280 }
  0x17   :  { %1402 = dma.done.wait [#allocation6], 32  }
  0x18   :  { %1403 = vsyncadd [#allocation6], 4294967264 }
  0x19   :  { %1404 = dma.done.wait [#allocation9], 1040  }
  0x1a   :  { %1405 = vsyncadd [#allocation9], 4294966256 }
  0x1b   :  { %1406 = dma.done.wait [#allocation12], 16  }
  0x1c   :  { %1407 = vsyncadd [#allocation12], 4294967280  ;;  %v145_v0 = vld [vmem:[%s1911_s1 + $0x38] sm:$0xff]  ;;  %v144_v2 = vld [vmem:[%s1911_s1 + $0x30] sm:$0xff]  ;;  %s1928_s25 = sld [smem:[#allocation17_spill]]  ;;  %vm150_vm0 = vcmask 523264  }
  0x1d   :  { %v242_v1 = vld [vmem:[%s1914_s4 + $0x38] sm:$0xff]  ;;  %162 = vmatpush.msra.mxu0 %v145_v0  ;;  %v241_v3 = vld [vmem:[%s1914_s4 + $0x30] sm:$0xff]  ;;  %v143_v4 = vld [vmem:[%s1911_s1 + $0x28] sm:$0xff]  ;;  %s1416_s0 = smov 112   ;;  %s1417_s17 = smov 80   ;;  %vm405_vm1 = vcmask 130048  }
  0x1e   :  { %251 = vmatpush.msra.mxu2 %v242_v1  ;;  %v240_v5 = vld [vmem:[%s1914_s4 + $0x28] sm:$0xff]  ;;  %v210_v6 = vld [vmem:[%s1913_s3 + $0x38] sm:$0xff]  ;;  %v209_v7 = vld [vmem:[%s1913_s3 + $0x30] sm:$0xff]  ;;  %s1418_s11 = smov 48   ;;  %s1422_s18 = smov 16   ;;  %vm361_vm5 = vcmask 64512  }
  0x1f   :  { %163 = vmatpush.msra.mxu0 %v144_v2  ;;  %v142_v8 = vld [vmem:[%s1911_s1 + $0x20] sm:$0xff]  ;;  %223 = vmatpush.msra.mxu1 %v210_v6  ;;  %v208_v10 = vld [vmem:[%s1913_s3 + $0x28] sm:$0xff]  ;;  %v141_v11 = vld [vmem:[%s1911_s1 + $0x18] sm:$0xff]  ;;  %vm601_vm14 = vcmask 254976   ;;  %vm613_vm15 = vcmask 261120  }
  0x20   :  { %252 = vmatpush.msra.mxu2 %v241_v3  ;;  %v239_v9 = vld [vmem:[%s1914_s4 + $0x20] sm:$0xff]  ;;  %v238_v12 = vld [vmem:[%s1914_s4 + $0x18] sm:$0xff]  ;;  %v140_v14 = vld [vmem:[%s1911_s1 + $0x10] sm:$0xff] }
  0x21   :  { %164 = vmatpush.msra.mxu0 %v143_v4  ;;  %224 = vmatpush.msra.mxu1 %v209_v7  ;;  %v207_v13 = vld [vmem:[%s1913_s3 + $0x20] sm:$0xff]  ;;  %v237_v15 = vld [vmem:[%s1914_s4 + $0x10] sm:$0xff]  ;;  %v278_v16 = vld [vmem:[%s1916_s6 + $0x78] sm:$0xff] }
  0x22   :  { %253 = vmatpush.msra.mxu2 %v240_v5  ;;  %v139_v17 = vld [vmem:[%s1911_s1 + $0x8] sm:$0xff]  ;;  %v206_v18 = vld [vmem:[%s1913_s3 + $0x18] sm:$0xff]  ;;  %v277_v19 = vld [vmem:[%s1916_s6 + $0x70] sm:$0xff]  ;;  %280 = vmatpush.msra.mxu3 %v278_v16 }
  0x23   :  { %165 = vmatpush.msra.mxu0 %v142_v8  ;;  %225 = vmatpush.msra.mxu1 %v208_v10  ;;  %v236_v20 = vld [vmem:[%s1914_s4 + $0x8] sm:$0xff]  ;;  %v138_v21 = vld [vmem:[%s1911_s1] sm:$0xff]  ;;  %v205_v23 = vld [vmem:[%s1913_s3 + $0x10] sm:$0xff] }
  0x24   :  { %254 = vmatpush.msra.mxu2 %v239_v9  ;;  %v235_v22 = vld [vmem:[%s1914_s4] sm:$0xff]  ;;  %v276_v24 = vld [vmem:[%s1916_s6 + $0x68] sm:$0xff]  ;;  %281 = vmatpush.msra.mxu3 %v277_v19  ;;  %v274_v29 = vld [vmem:[%s1916_s6 + $0x58] sm:$0xff] }
  0x25   :  { %166 = vmatpush.msra.mxu0 %v141_v11  ;;  %226 = vmatpush.msra.mxu1 %v207_v13  ;;  %v137_v25 = vld [vmem:[%s1928_s25] sm:$0xff]  ;;  %v204_v26 = vld [vmem:[%s1913_s3 + $0x8] sm:$0xff]  ;;  %v273_v30 = vld [vmem:[%s1916_s6 + $0x50] sm:$0xff] }
  0x26   :  { %255 = vmatpush.msra.mxu2 %v238_v12  ;;  %282 = vmatpush.msra.mxu3 %v276_v24  ;;  %v275_v27 = vld [vmem:[%s1916_s6 + $0x60] sm:$0xff]  ;;  %v272_v31 = vld [vmem:[%s1916_s6 + $0x48] sm:$0xff]  ;;  %v270_v33 = vld [vmem:[%s1916_s6 + $0x38] sm:$0xff] }
  0x27   :  { %167 = vmatpush.msra.mxu0 %v140_v14  ;;  %227 = vmatpush.msra.mxu1 %v206_v18  ;;  %v203_v28 = vld [vmem:[%s1913_s3] sm:$0xff]  ;;  %v269_v34 = vld [vmem:[%s1916_s6 + $0x30] sm:$0xff]  ;;  %v268_v35 = vld [vmem:[%s1916_s6 + $0x28] sm:$0xff]  ;;  %s1421_s3 = smov 32   ;;  %v1423_v18 = vmov 0.0  }
  0x28   :  { %256 = vmatpush.msra.mxu2 %v237_v15  ;;  %283 = vmatpush.msra.mxu3 %v275_v27  ;;  %v271_v32 = vld [vmem:[%s1916_s6 + $0x40] sm:$0xff]  ;;  %v266_v37 = vld [vmem:[%s1916_s6 + $0x18] sm:$0xff]  ;;  %v265_v38 = vld [vmem:[%s1916_s6 + $0x10] sm:$0xff] }
  0x29   :  { %168 = vmatpush.msra.mxu0 %v139_v17  ;;  %228 = vmatpush.msra.mxu1 %v205_v23  ;;  %v267_v36 = vld [vmem:[%s1916_s6 + $0x20] sm:$0xff]  ;;  %v264_v39 = vld [vmem:[%s1916_s6 + $0x8] sm:$0xff]  ;;  %v358_v52 = vld [vmem:[%s1917_s7 + $0x18] sm:$0xff] }
  0x2a   :  { %257 = vmatpush.msra.mxu2 %v236_v20  ;;  %284 = vmatpush.msra.mxu3 %v274_v29  ;;  %v263_v40 = vld [vmem:[%s1916_s6] sm:$0xff]  ;;  %v1185_v44 = vld [vmem:[#allocation3] ss:$0 sm:$0xff]  ;;  %s1420_s6 = smov 64   ;;  %v464_v57 = vld [vmem:[%s1919_s9 + $0x78] sm:$0xff] }
  0x2b   :  { %169 = vmatpush.msra.mxu0 %v138_v21  ;;  %229 = vmatpush.msra.mxu1 %v204_v26  ;;  %v1184_v41 = vld [vmem:[%s1912_s2] ss:$0 sm:$0xff]  ;;  %s1419_s2 = smov 96   ;;  %v356_v53 = vld [vmem:[%s1917_s7 + $0x8] sm:$0xff]  ;;  %v460_v61 = vld [vmem:[%s1919_s9 + $0x58] sm:$0xff] }
  0x2c   :  { %258 = vmatpush.msra.mxu2 %v235_v22  ;;  %1146 = vmatmul.msk.f32.vlgmr.msra.gmra.mxu0 %vm150_vm0, %v137_v25  ;;  %v462_v58 = vld [vmem:[%s1919_s9 + $0x68] sm:$0xff]  ;;  %v359_v63 = vld [vmem:[%s1918_s8] sm:$0xff]  ;;  %v456_v4 = vld [vmem:[%s1919_s9 + $0x38] sm:$0xff] }
  0x2d   :  { %1148 = vmatmul.msk.f32.vlgmr.msra.gmra.mxu2 %vm150_vm0, %v137_v25  ;;  %301 = vmatpush.msrb.mxu0 %v278_v16  ;;  %v458_v0 = vld [vmem:[%s1919_s9 + $0x48] sm:$0xff]  ;;  %v452_v8 = vld [vmem:[%s1919_s9 + $0x18] sm:$0xff]  ;;  %v1699_v17 = vld [vmem:[%s1919_s9 + $0x70] sm:$0xff] }
  0x2e   :  { %230 = vmatpush.msra.mxu1 %v203_v28  ;;  %285 = vmatpush.msra.mxu3 %v273_v30  ;;  %v360_v3 = vld [vmem:[%s1918_s8 + $0x8] sm:$0xff]  ;;  %v1708_v20 = vld [vmem:[%s1919_s9 + $0x60] sm:$0xff]  ;;  %v1714_v21 = vld [vmem:[%s1919_s9 + $0x50] sm:$0xff] }
  0x2f   :  { %302 = vmatpush.msrb.mxu0 %v277_v19  ;;  %1147 = vmatmul.msk.f32.vlgmr.msra.gmra.mxu1 %vm150_vm0, %v137_v25  ;;  %v454_v5 = vld [vmem:[%s1919_s9 + $0x28] sm:$0xff]  ;;  %v457_v22 = vld [vmem:[%s1919_s9 + $0x40] sm:$0xff]  ;;  %v455_v23 = vld [vmem:[%s1919_s9 + $0x30] sm:$0xff] }
  0x30   :  { %322 = vmatpush.msrb.mxu1 %v278_v16  ;;  %286 = vmatpush.msra.mxu3 %v272_v31  ;;  %v450_v12 = vld [vmem:[%s1919_s9 + $0x8] sm:$0xff]  ;;  %v453_v25 = vld [vmem:[%s1919_s9 + $0x20] sm:$0xff] }
  0x31   :  { %303 = vmatpush.msrb.mxu0 %v276_v24  ;;  %380 = vmatpush.msrb.mxu2 %v359_v63 }
  0x32   :  { %323 = vmatpush.msrb.mxu1 %v277_v19  ;;  %287 = vmatpush.msra.mxu3 %v271_v32 }
  0x33   :  { %304 = vmatpush.msrb.mxu0 %v275_v27  ;;  %400 = vmatpush.msra.mxu2 %v360_v3 }
  0x34   :  { %324 = vmatpush.msrb.mxu1 %v276_v24  ;;  %288 = vmatpush.msra.mxu3 %v270_v33 }
  0x35   :  { %305 = vmatpush.msrb.mxu0 %v274_v29 }
  0x36   :  { %325 = vmatpush.msrb.mxu1 %v275_v27  ;;  %289 = vmatpush.msra.mxu3 %v269_v34  ;;  %v451_v27 = vld [vmem:[%s1919_s9 + $0x10] sm:$0xff] }
  0x37   :  { %306 = vmatpush.msrb.mxu0 %v273_v30 }
  0x38   :  { %326 = vmatpush.msrb.mxu1 %v274_v29  ;;  %290 = vmatpush.msra.mxu3 %v268_v35  ;;  %v449_v29 = vld [vmem:[%s1919_s9] sm:$0xff] }
  0x39   :  { %307 = vmatpush.msrb.mxu0 %v272_v31 }
  0x3a   :  { %327 = vmatpush.msrb.mxu1 %v273_v30  ;;  %291 = vmatpush.msra.mxu3 %v267_v36 }
  0x3b   :  { %308 = vmatpush.msrb.mxu0 %v271_v32 }
  0x3c   :  { %328 = vmatpush.msrb.mxu1 %v272_v31  ;;  %292 = vmatpush.msra.mxu3 %v266_v37 }
  0x3d   :  { %309 = vmatpush.msrb.mxu0 %v270_v33 }
  0x3e   :  { %329 = vmatpush.msrb.mxu1 %v271_v32  ;;  %293 = vmatpush.msra.mxu3 %v265_v38 }
  0x3f   :  { %310 = vmatpush.msrb.mxu0 %v269_v34 }
  0x40   :  { %330 = vmatpush.msrb.mxu1 %v270_v33  ;;  %294 = vmatpush.msra.mxu3 %v264_v39 }
  0x41   :  { %311 = vmatpush.msrb.mxu0 %v268_v35 }
  0x42   :  { %331 = vmatpush.msrb.mxu1 %v269_v34  ;;  %295 = vmatpush.msra.mxu3 %v263_v40 }
  0x43   :  { %312 = vmatpush.msrb.mxu0 %v267_v36 }
  0x44   :  { %332 = vmatpush.msrb.mxu1 %v268_v35  ;;  %498 = vmatpush.msrb.mxu3 %v464_v57 }
  0x45   :  { %313 = vmatpush.msrb.mxu0 %v266_v37 }
  0x46   :  { %333 = vmatpush.msrb.mxu1 %v267_v36  ;;  %499 = vmatpush.msrb.mxu3 %v462_v58  ;;  %v357_v36 = vld [vmem:[%s1917_s7 + $0x10] sm:$0xff] }
  0x47   :  { %314 = vmatpush.msrb.mxu0 %v265_v38 }
  0x48   :  { %334 = vmatpush.msrb.mxu1 %v266_v37  ;;  %500 = vmatpush.msrb.mxu3 %v460_v61  ;;  %v355_v37 = vld [vmem:[%s1917_s7] sm:$0xff] }
  0x49   :  { %315 = vmatpush.msrb.mxu0 %v264_v39 }
  0x4a   :  { %335 = vmatpush.msrb.mxu1 %v265_v38  ;;  %501 = vmatpush.msrb.mxu3 %v458_v0 }
  0x4b   :  { %316 = vmatpush.msrb.mxu0 %v263_v40 }
  0x4c   :  { %336 = vmatpush.msrb.mxu1 %v264_v39  ;;  %502 = vmatpush.msrb.mxu3 %v456_v4 }
  0x4d   :  { %443 = vmatpush.msra.mxu0 %v358_v52 }
  0x4e   :  { %337 = vmatpush.msrb.mxu1 %v263_v40  ;;  %503 = vmatpush.msrb.mxu3 %v454_v5 }
  0x4f   :  { %444 = vmatpush.msra.mxu0 %v356_v53 }
  0x50   :  { %646 = vmatpush.msra.mxu1 %v464_v57  ;;  %504 = vmatpush.msrb.mxu3 %v452_v8 }
  0x52   :  { %647 = vmatpush.msra.mxu1 %v462_v58  ;;  %505 = vmatpush.msrb.mxu3 %v450_v12 }
  0x54   :  { %648 = vmatpush.msra.mxu1 %v460_v61 }
  0x56   :  { %649 = vmatpush.msra.mxu1 %v458_v0 }
  0x58   :  { %650 = vmatpush.msra.mxu1 %v456_v4 }
  0x5a   :  { %651 = vmatpush.msra.mxu1 %v454_v5 }
  0x5c   :  { %652 = vmatpush.msra.mxu1 %v452_v8 }
  0x5e   :  { %653 = vmatpush.msra.mxu1 %v450_v12 }
  0xa9   :  { %v171_v42 = vpop.f32.mrf.mxu0 }
  0xaa   :  { %v172_v43 = vadd.f32 %v1184_v41, %v171_v42 }
  0xac   :  { %175 = vrot.lane.b32.xlu0 %v172_v43, %s1416_s0  ;;  %183 = vrot.lane.b32.xlu1 %v172_v43, %s1417_s17  ;;  %v232_v45 = vpop.f32.mrf.mxu1 }
  0xad   :  { %191 = vrot.lane.b32.xlu2 %v172_v43, %s1418_s11  ;;  %v233_v46 = vadd.f32 %v1185_v44, %v232_v45 }
  0xaf   :  { %v300_v48 = vmul.f32 %v233_v46, %v233_v46 }
  0xb0   :  { %v260_v47 = vpop.f32.mrf.mxu2 }
  0xb1   :  { %v261_v49 = vadd.f32 %v1185_v44, %v260_v47  ;;  %317 = vmatmul.f32.vlgmr.msrb.gmra.mxu0 %v300_v48  ;;  %v1752_v44 = vld [vmem:[#allocation7] ss:$0 sm:$0xff] }
  0xb2   :  { %626 = vmatpush.msrb.mxu0 %v1699_v17 }
  0xb3   :  { %v321_v50 = vmul.f32 %v261_v49, %v261_v49  ;;  %v279_v51 = vmul.f32 %v261_v49, %v233_v46 }
  0xb4   :  { %179 = vrot.lane.b32.xlu0 %v172_v43, %s1419_s2  ;;  %187 = vrot.lane.b32.xlu1 %v172_v43, %s1420_s6 }
  0xb5   :  { %296 = vmatmul.f32.vlgmr.msra.gmra.mxu3 %v279_v51  ;;  %338 = vmatmul.f32.vlgmr.msrb.gmra.mxu1 %v321_v50  ;;  %v1759_v50 = vld [vmem:[#allocation5] ss:$0 sm:$0xff] }
  0xb6   :  { %195 = vrot.lane.b32.xlu2 %v172_v43, %s1421_s3  ;;  %797 = vmatpush.msra.mxu3 %v464_v57 }
  0xb7   :  { %627 = vmatpush.msrb.mxu0 %v1708_v20  ;;  %948 = vmatpush.msrb.mxu1 %v464_v57 }
  0xb8   :  { %798 = vmatpush.msra.mxu3 %v462_v58 }
  0xb9   :  { %628 = vmatpush.msrb.mxu0 %v1714_v21  ;;  %949 = vmatpush.msrb.mxu1 %v462_v58 }
  0xba   :  { %799 = vmatpush.msra.mxu3 %v460_v61 }
  0xbb   :  { %629 = vmatpush.msrb.mxu0 %v457_v22  ;;  %950 = vmatpush.msrb.mxu1 %v460_v61 }
  0xbc   :  { %199 = vrot.lane.b32.xlu0 %v172_v43, %s1422_s18  ;;  %800 = vmatpush.msra.mxu3 %v458_v0 }
  0xbd   :  { %506 = vmatmul.f32.vlgmr.msrb.gmra.mxu3 %v1423_v18  ;;  %630 = vmatpush.msrb.mxu0 %v455_v23 }
  0xbe   :  { %951 = vmatpush.msrb.mxu1 %v458_v0  ;;  %801 = vmatpush.msra.mxu3 %v456_v4 }
  0xbf   :  { %631 = vmatpush.msrb.mxu0 %v453_v25 }
  0xc0   :  { %952 = vmatpush.msrb.mxu1 %v456_v4  ;;  %802 = vmatpush.msra.mxu3 %v454_v5 }
  0xc1   :  { %632 = vmatpush.msrb.mxu0 %v451_v27 }
  0xc2   :  { %953 = vmatpush.msrb.mxu1 %v454_v5  ;;  %803 = vmatpush.msra.mxu3 %v452_v8 }
  0xc3   :  { %633 = vmatpush.msrb.mxu0 %v449_v29 }
  0xc4   :  { %954 = vmatpush.msrb.mxu1 %v452_v8  ;;  %804 = vmatpush.msra.mxu3 %v450_v12 }
  0xc6   :  { %955 = vmatpush.msrb.mxu1 %v450_v12 }
 0x107   :  { %v192_v56 = vpop.permute.xlu2 %191 }
 0x110   :  { %v196_v7 = vpop.permute.xlu2 %195 }
 0x11e   :  { %v176_v54 = vpop.permute.xlu0 %175  ;;  %v184_v55 = vpop.permute.xlu1 %183 }
 0x11f   :  { %v178_v59 = vmax.f32 %v172_v43, %v176_v54 }
 0x126   :  { %v180_v60 = vpop.permute.xlu0 %179  ;;  %v188_v1 = vpop.permute.xlu1 %187 }
 0x127   :  { %v182_v62 = vmax.f32 %v178_v59, %v180_v60 }
 0x129   :  { %v186_v2 = vmax.f32 %v182_v62, %v184_v55 }
 0x12b   :  { %v190_v6 = vmax.f32 %v186_v2, %v188_v1 }
 0x12d   :  { %v194_v9 = vmax.f32 %v190_v6, %v192_v56 }
 0x12e   :  { %v200_v10 = vpop.permute.xlu0 %199  ;;  %v318_v11 = vpop.f32.mrf.mxu0 }
 0x12f   :  { %v198_v13 = vmax.f32 %v194_v9, %v196_v7 }
 0x131   :  { %v1694_v15 = vmax.f32 %v198_v13, %v200_v10 }
 0x132   :  { %v339_v14 = vpop.f32.mrf.mxu1 }
 0x133   :  { %v342_v16 = vmul.f32 %v339_v14, %v318_v11  ;;  %1152 = vmatmul.msk.f32.vlgmr.msra.gmra.mxu0 %vm405_vm1, %v1694_v15 }
 0x134   :  { %928 = vmatpush.msra.mxu0 %v1699_v17 }
 0x135   :  { %v343_v19 = vmax.f32 %v342_v16, 1e-16 }
 0x136   :  { %929 = vmatpush.msra.mxu0 %v1708_v20 }
 0x137   :  { %1190 = vrsqrt.f32 %v343_v19  ;;  %vm350_vm3 = vweird.f32 %v343_v19 }
 0x138   :  { %930 = vmatpush.msra.mxu0 %v1714_v21  ;;  %v297_v33 = vpop.f32.mrf.mxu3 }
 0x13a   :  { %931 = vmatpush.msra.mxu0 %v457_v22 }
 0x13c   :  { %932 = vmatpush.msra.mxu0 %v455_v23 }
 0x13d   :  { %v1191_v24 = vpop.eup %1190 }
 0x13e   :  { %v345_v26 = vmul.f32 %v1191_v24, %v343_v19  ;;  %vm351_vm2 = vweird.f32 %v1191_v24  ;;  %933 = vmatpush.msra.mxu0 %v453_v25 }
 0x13f   :  { %vm352_vm4 = vmor %vm350_vm3, %vm351_vm2 }
 0x140   :  { %v346_v28 = vmul.f32 %v1191_v24, %v345_v26  ;;  %934 = vmatpush.msra.mxu0 %v451_v27  ;;  %v507_v39 = vpop.f32.mrf.mxu3 }
 0x141   :  { %v516_v40 = vrot.slane %v507_v39, 2 }
 0x142   :  { %v347_v30 = vmul.f32 0.5, %v346_v28  ;;  %935 = vmatpush.msra.mxu0 %v449_v29 }
 0x144   :  { %v348_v31 = vsub.f32 1.5, %v347_v30 }
 0x146   :  { %v349_v32 = vmul.f32 %v1191_v24, %v348_v31 }
 0x148   :  { %v353_v34 = vsel %vm352_vm4, %v1191_v24, %v349_v32 }
 0x149   :  { %v354_v35 = vmul.f32 %v353_v34, %v297_v33 }
 0x14b   :  { %1149 = vmatmul.msk.f32.vlgmr.msrb.gmra.mxu2 %vm361_vm5, %v354_v35 }
 0x14c   :  { %423 = vmatpush.msrb.mxu2 %v357_v36 }
 0x14e   :  { %424 = vmatpush.msrb.mxu2 %v355_v37 }
 0x153   :  { %1150 = vmatmul.msk.f32.vlgmr.msra.gmra.mxu2 %vm361_vm5, %v354_v35 }
 0x154   :  { %478 = vmatpush.msra.mxu2 %v1699_v17 }
 0x156   :  { %479 = vmatpush.msra.mxu2 %v1708_v20 }
 0x158   :  { %480 = vmatpush.msra.mxu2 %v1714_v21 }
 0x15a   :  { %481 = vmatpush.msra.mxu2 %v457_v22 }
 0x15b   :  { %1151 = vmatmul.msk.f32.vlgmr.msrb.gmra.mxu2 %vm405_vm1, %v1694_v15 }
 0x15c   :  { %482 = vmatpush.msra.mxu2 %v455_v23 }
 0x15e   :  { %483 = vmatpush.msra.mxu2 %v453_v25 }
 0x160   :  { %484 = vmatpush.msra.mxu2 %v451_v27 }
 0x162   :  { %485 = vmatpush.msra.mxu2 %v449_v29 }
 0x163   :  { %486 = vmatmul.f32.vlgmr.msra.gmra.mxu2 %v1423_v18 }
 0x164   :  { %777 = vmatpush.msrb.mxu2 %v1699_v17 }
 0x166   :  { %778 = vmatpush.msrb.mxu2 %v1708_v20 }
 0x168   :  { %779 = vmatpush.msrb.mxu2 %v1714_v21 }
 0x16a   :  { %780 = vmatpush.msrb.mxu2 %v457_v22 }
 0x16c   :  { %781 = vmatpush.msrb.mxu2 %v455_v23 }
 0x16e   :  { %782 = vmatpush.msrb.mxu2 %v453_v25 }
 0x170   :  { %783 = vmatpush.msrb.mxu2 %v451_v27 }
 0x172   :  { %784 = vmatpush.msrb.mxu2 %v449_v29 }
 0x1b0   :  { %v446_v41 = vpop.f32.mrf.mxu0 }
 0x1ce   :  { %v382_v38 = vpop.f32.mrf.mxu2 }
 0x1d6   :  { %v402_v42 = vpop.f32.mrf.mxu2 }
 0x1d7   :  { %v1750_v43 = vadd.f32 %v446_v41, %v402_v42 }
 0x1d9   :  { %v518_v45 = vadd.f32 %v516_v40, %v1750_v43 }
 0x1db   :  { %v522_v46 = vadd.f32 %v1752_v44, %v518_v45 }
 0x1dd   :  { %1192 = vtanh.f32 %v522_v46  ;;  %v1154_v57 = vmul.f32 -1.442695, %v522_v46 }
 0x1de   :  { %v426_v47 = vpop.f32.mrf.mxu2 }
 0x1df   :  { %v1757_v49 = vadd.f32 %v426_v47, %v382_v38 }
 0x1e3   :  { %v1193_v48 = vpop.eup %1192 }
 0x1e4   :  { %582 = vrot.lane.b32.xlu1 %v1193_v48, %s1420_s6 }
 0x1e6   :  { %v487_v51 = vpop.f32.mrf.mxu2 }
 0x1e7   :  { %v510_v52 = vadd.f32 %v487_v51, %v1757_v49 }
 0x1e9   :  { %v514_v53 = vadd.f32 %v1759_v50, %v510_v52 }
 0x1eb   :  { %1194 = vtanh.f32 %v514_v53  ;;  %v1153_v55 = vmul.f32 -1.442695, %v514_v53 }
 0x1ed   :  { %1196 = vpow2.f32 %v1153_v55 }
 0x1ee   :  { %1198 = vpow2.f32 %v1154_v57 }
 0x1f1   :  { %v1195_v54 = vpop.eup %1194 }
 0x1f2   :  { %545 = vrot.lane.b32.xlu2 %v1195_v54, %s1420_s6 }
 0x1f3   :  { %v1197_v56 = vpop.eup %1196 }
 0x1f4   :  { %v526_v58 = vadd.f32 1.0, %v1197_v56  ;;  %v1199_v59 = vpop.eup %1198 }
 0x1f5   :  { %v563_v61 = vadd.f32 1.0, %v1199_v59 }
 0x1f6   :  { %1200 = vrcp.f32 %v526_v58  ;;  %v538_v4 = vand.u32 2147483648, %v526_v58  ;;  %vm532_vm7 = vweird.f32 %v526_v58  ;;  %v536_v5 = vand.u32 2147483647, %v526_v58 }
 0x1f7   :  { %1202 = vrcp.f32 %v563_v61  ;;  %v575_v14 = vand.u32 2147483648, %v563_v61  ;;  %vm569_vm11 = vweird.f32 %v563_v61  ;;  %v573_v15 = vand.u32 2147483647, %v563_v61 }
 0x1f8   :  { %v539_v8 = vor.u32 1.1754944e-38, %v538_v4  ;;  %vm537_vm9 = vcmp.eq.f32.partialorder %v536_v5, 8.507059e+37 }
 0x1f9   :  { %v576_v17 = vor.u32 1.1754944e-38, %v575_v14  ;;  %vm574_vm13 = vcmp.eq.f32.partialorder %v573_v15, 8.507059e+37 }
 0x1fc   :  { %v1201_v60 = vpop.eup %1200 }
 0x1fd   :  { %v528_v62 = vmul.f32 %v1201_v60, %v526_v58  ;;  %v1203_v0 = vpop.eup %1202  ;;  %vm533_vm6 = vweird.f32 %v1201_v60 }
 0x1fe   :  { %v565_v2 = vmul.f32 %v1203_v0, %v563_v61  ;;  %vm534_vm8 = vmor %vm532_vm7, %vm533_vm6  ;;  %vm570_vm10 = vweird.f32 %v1203_v0 }
 0x1ff   :  { %v529_v63 = vsub.f32 1.0, %v528_v62  ;;  %vm571_vm12 = vmor %vm569_vm11, %vm570_vm10 }
 0x200   :  { %v566_v6 = vsub.f32 1.0, %v565_v2 }
 0x201   :  { %v530_v1 = vmul.f32 %v1201_v60, %v529_v63 }
 0x202   :  { %v567_v9 = vmul.f32 %v1203_v0, %v566_v6 }
 0x203   :  { %v531_v3 = vadd.f32 %v1201_v60, %v530_v1 }
 0x204   :  { %v568_v13 = vadd.f32 %v1203_v0, %v567_v9 }
 0x205   :  { %v535_v7 = vsel %vm534_vm8, %v1201_v60, %v531_v3 }
 0x206   :  { %v540_v11 = vsel %vm537_vm9, %v539_v8, %v535_v7  ;;  %v572_v16 = vsel %vm571_vm12, %v1203_v0, %v568_v13  ;;  %vm752_vm9 = vcmask 257026  }
 0x207   :  { %v577_v19 = vsel %vm574_vm13, %v576_v17, %v572_v16  ;;  %v543_v21 = vmul.f32 0.0, %v540_v11 }
 0x208   :  { %v580_v25 = vmul.f32 0.0, %v577_v19 }
 0x24c   :  { %v546_v10 = vpop.permute.xlu2 %545 }
 0x24d   :  { %v548_v12 = vmul.f32 %v546_v10, %v540_v11 }
 0x24f   :  { %550 = vrot.lane.b32.xlu1 %v548_v12, %s1421_s3 }
 0x256   :  { %v583_v18 = vpop.permute.xlu1 %582 }
 0x257   :  { %v585_v20 = vmul.f32 %v583_v18, %v577_v19 }
 0x259   :  { %587 = vrot.lane.b32.xlu0 %v585_v20, %s1421_s3 }
 0x2c1   :  { %v551_v22 = vpop.permute.xlu1 %550 }
 0x2c2   :  { %v1766_v23 = vadd.f32 %v551_v22, %v543_v21 }
 0x2c4   :  { %1204 = vtanh.f32 %v1766_v23  ;;  %v689_v22 = vrot.slane %v1766_v23, 6 }
 0x2ca   :  { %v1205_v24 = vpop.eup %1204 }
 0x2cb   :  { %v588_v26 = vpop.permute.xlu0 %587  ;;  %556 = vrot.lane.b32.xlu0 %v1205_v24, %s1420_s6 }
 0x2cc   :  { %v1770_v27 = vadd.f32 %v588_v26, %v580_v25 }
 0x2ce   :  { %1206 = vtanh.f32 %v1770_v27  ;;  %v729_v17 = vrot.slane %v1770_v27, 2 }
 0x2d4   :  { %v1207_v28 = vpop.eup %1206 }
 0x2d5   :  { %593 = vrot.lane.b32.xlu2 %v1207_v28, %s1420_s6 }
 0x32f   :  { %v594_v29 = vpop.permute.xlu2 %593 }
 0x330   :  { %v1774_v30 = vmul.f32 %v594_v29, %v577_v19 }
 0x332   :  { %v609_v31 = vrot.slane %v1774_v30, 6 }
 0x334   :  { %610 = vrot.lane.b32.xlu2 %v609_v31, %s1420_s6 }
 0x33d   :  { %v557_v32 = vpop.permute.xlu0 %556 }
 0x33e   :  { %v559_v33 = vmul.f32 %v557_v32, %v540_v11 }
 0x340   :  { %598 = vrot.lane.b32.xlu1 %v559_v33, %s1421_s3 }
 0x38e   :  { %v611_v34 = vpop.permute.xlu2 %610 }
 0x3b2   :  { %v599_v35 = vpop.permute.xlu1 %598 }
 0x3b3   :  { %602 = vst.msk [vmem:[#allocation2] sm:$0x3] %vm601_vm14, %v599_v35  ;;  %v614_v36 = vsel %vm613_vm15, %v599_v35, %v611_v34 }
 0x3b4   :  { %1155 = vmatmul.msk.f32.vlgmr.msrb.gmra.mxu0 %vm150_vm0, %v614_v36  ;;  %1156 = vmatmul.msk.f32.vlgmr.msra.gmra.mxu1 %vm150_vm0, %v614_v36 }
 0x431   :  { %v635_v37 = vpop.f32.mrf.mxu0  ;;  %v655_v38 = vpop.f32.mrf.mxu1 }
 0x432   :  { %v659_v39 = vrot.slane %v635_v37, 6  ;;  %v664_v40 = vrot.slane %v655_v38, 4 }
 0x434   :  { %v661_v41 = vadd.f32 %v659_v39, %v1757_v49  ;;  %v666_v42 = vadd.f32 %v664_v40, %v1750_v43 }
 0x436   :  { %v662_v45 = vadd.f32 %v1759_v50, %v661_v41  ;;  %v667_v46 = vadd.f32 %v1752_v44, %v666_v42 }
 0x438   :  { %1208 = vtanh.f32 %v662_v45  ;;  %v1157_v51 = vmul.f32 -1.442695, %v662_v45  ;;  %v1158_v52 = vmul.f32 -1.442695, %v667_v46 }
 0x439   :  { %1210 = vtanh.f32 %v667_v46 }
 0x43a   :  { %1212 = vpow2.f32 %v1157_v51 }
 0x43b   :  { %1214 = vpow2.f32 %v1158_v52 }
 0x43e   :  { %v1209_v47 = vpop.eup %1208 }
 0x43f   :  { %v1211_v48 = vpop.eup %1210  ;;  %693 = vrot.lane.b32.xlu1 %v1209_v47, %s1420_s6 }
 0x440   :  { %733 = vrot.lane.b32.xlu0 %v1211_v48, %s1420_s6  ;;  %v1213_v53 = vpop.eup %1212 }
 0x441   :  { %v1215_v54 = vpop.eup %1214  ;;  %v671_v55 = vadd.f32 1.0, %v1213_v53 }
 0x442   :  { %v711_v56 = vadd.f32 1.0, %v1215_v54 }
 0x443   :  { %1216 = vrcp.f32 %v671_v55  ;;  %v683_v3 = vand.u32 2147483648, %v671_v55  ;;  %vm677_vm3 = vweird.f32 %v671_v55  ;;  %v681_v5 = vand.u32 2147483647, %v671_v55 }
 0x444   :  { %1218 = vrcp.f32 %v711_v56  ;;  %v723_v4 = vand.u32 2147483648, %v711_v56  ;;  %vm717_vm4 = vweird.f32 %v711_v56  ;;  %v721_v6 = vand.u32 2147483647, %v711_v56 }
 0x445   :  { %v684_v9 = vor.u32 1.1754944e-38, %v683_v3  ;;  %vm682_vm7 = vcmp.eq.f32.partialorder %v681_v5, 8.507059e+37 }
 0x446   :  { %v724_v10 = vor.u32 1.1754944e-38, %v723_v4  ;;  %vm722_vm8 = vcmp.eq.f32.partialorder %v721_v6, 8.507059e+37 }
 0x449   :  { %v1217_v57 = vpop.eup %1216 }
 0x44a   :  { %v1219_v58 = vpop.eup %1218  ;;  %v673_v59 = vmul.f32 %v1217_v57, %v671_v55  ;;  %vm678_vm1 = vweird.f32 %v1217_v57 }
 0x44b   :  { %v713_v60 = vmul.f32 %v1219_v58, %v711_v56  ;;  %vm718_vm2 = vweird.f32 %v1219_v58  ;;  %vm679_vm5 = vmor %vm677_vm3, %vm678_vm1 }
 0x44c   :  { %v674_v61 = vsub.f32 1.0, %v673_v59  ;;  %vm719_vm6 = vmor %vm717_vm4, %vm718_vm2 }
 0x44d   :  { %v714_v62 = vsub.f32 1.0, %v713_v60 }
 0x44e   :  { %v675_v63 = vmul.f32 %v1217_v57, %v674_v61 }
 0x44f   :  { %v715_v0 = vmul.f32 %v1219_v58, %v714_v62 }
 0x450   :  { %v676_v1 = vadd.f32 %v1217_v57, %v675_v63 }
 0x451   :  { %v716_v2 = vadd.f32 %v1219_v58, %v715_v0 }
 0x452   :  { %v680_v7 = vsel %vm679_vm5, %v1217_v57, %v676_v1 }
 0x453   :  { %v720_v8 = vsel %vm719_vm6, %v1219_v58, %v716_v2  ;;  %v685_v12 = vsel %vm682_vm7, %v684_v9, %v680_v7 }
 0x454   :  { %v725_v14 = vsel %vm722_vm8, %v724_v10, %v720_v8  ;;  %v691_v24 = vmul.f32 %v689_v22, %v685_v12 }
 0x455   :  { %v731_v18 = vmul.f32 %v729_v17, %v725_v14 }
 0x4b1   :  { %v694_v11 = vpop.permute.xlu1 %693 }
 0x4b2   :  { %v734_v13 = vpop.permute.xlu0 %733  ;;  %v696_v15 = vmul.f32 %v694_v11, %v685_v12 }
 0x4b3   :  { %v736_v16 = vmul.f32 %v734_v13, %v725_v14 }
 0x4b4   :  { %698 = vrot.lane.b32.xlu0 %v696_v15, %s1421_s3 }
 0x4b5   :  { %738 = vrot.lane.b32.xlu2 %v736_v16, %s1421_s3 }
 0x50f   :  { %v739_v19 = vpop.permute.xlu2 %738 }
 0x510   :  { %v1791_v20 = vadd.f32 %v739_v19, %v731_v18 }
 0x512   :  { %1220 = vtanh.f32 %v1791_v20  ;;  %v880_v18 = vrot.slane %v1791_v20, 2 }
 0x518   :  { %v1221_v21 = vpop.eup %1220 }
 0x519   :  { %744 = vrot.lane.b32.xlu1 %v1221_v21, %s1420_s6 }
 0x526   :  { %v699_v25 = vpop.permute.xlu0 %698 }
 0x527   :  { %v1796_v26 = vadd.f32 %v699_v25, %v691_v24 }
 0x529   :  { %1222 = vtanh.f32 %v1796_v26  ;;  %v840_v17 = vrot.slane %v1796_v26, 6 }
 0x52f   :  { %v1223_v28 = vpop.eup %1222 }
 0x530   :  { %704 = vrot.lane.b32.xlu2 %v1223_v28, %s1420_s6 }
 0x58a   :  { %v705_v27 = vpop.permute.xlu2 %704 }
 0x58b   :  { %v745_v29 = vpop.permute.xlu1 %744  ;;  %v707_v31 = vmul.f32 %v705_v27, %v685_v12 }
 0x58c   :  { %v1800_v32 = vmul.f32 %v745_v29, %v725_v14 }
 0x58d   :  { %749 = vrot.lane.b32.xlu0 %v707_v31, %s1421_s3 }
 0x58e   :  { %v760_v33 = vrot.slane %v1800_v32, 2 }
 0x590   :  { %761 = vrot.lane.b32.xlu1 %v760_v33, %s1420_s6 }
 0x5ff   :  { %v750_v23 = vpop.permute.xlu0 %749 }
 0x600   :  { %753 = vst.msk [vmem:[#allocation2] sm:$0xc] %vm752_vm9, %v750_v23 }
 0x602   :  { %v762_v34 = vpop.permute.xlu1 %761 }
 0x603   :  { %v764_v35 = vsel %vm613_vm15, %v750_v23, %v762_v34 }
 0x604   :  { %v766_v36 = vrot.slane %v764_v35, 2 }
 0x606   :  { %1159 = vmatmul.msk.f32.vlgmr.msrb.gmra.mxu2 %vm150_vm0, %v766_v36  ;;  %1160 = vmatmul.msk.f32.vlgmr.msra.gmra.mxu3 %vm150_vm0, %v766_v36 }
 0x689   :  { %v786_v37 = vpop.f32.mrf.mxu2  ;;  %v806_v38 = vpop.f32.mrf.mxu3 }
 0x68a   :  { %v810_v39 = vrot.slane %v786_v37, 4  ;;  %v815_v40 = vrot.slane %v806_v38, 6 }
 0x68c   :  { %v812_v41 = vadd.f32 %v810_v39, %v1757_v49  ;;  %v817_v42 = vadd.f32 %v815_v40, %v1750_v43 }
 0x68e   :  { %v813_v45 = vadd.f32 %v1759_v50, %v812_v41  ;;  %v818_v46 = vadd.f32 %v1752_v44, %v817_v42 }
 0x690   :  { %1224 = vtanh.f32 %v813_v45  ;;  %v1162_v51 = vmul.f32 -1.442695, %v818_v46  ;;  %v1161_v55 = vmul.f32 -1.442695, %v813_v45 }
 0x691   :  { %1226 = vtanh.f32 %v818_v46 }
 0x692   :  { %1228 = vpow2.f32 %v1162_v51 }
 0x696   :  { %v1225_v47 = vpop.eup %1224 }
 0x697   :  { %v1227_v48 = vpop.eup %1226  ;;  %844 = vrot.lane.b32.xlu0 %v1225_v47, %s1420_s6 }
 0x698   :  { %884 = vrot.lane.b32.xlu2 %v1227_v48, %s1420_s6  ;;  %v1229_v52 = vpop.eup %1228 }
 0x699   :  { %v862_v53 = vadd.f32 1.0, %v1229_v52 }
 0x69b   :  { %1230 = vrcp.f32 %v862_v53  ;;  %v874_v62 = vand.u32 2147483648, %v862_v53  ;;  %vm868_vm11 = vweird.f32 %v862_v53  ;;  %v872_v63 = vand.u32 2147483647, %v862_v53 }
 0x69c   :  { %1232 = vpow2.f32 %v1161_v55 }
 0x69d   :  { %v875_v1 = vor.u32 1.1754944e-38, %v874_v62  ;;  %vm873_vm13 = vcmp.eq.f32.partialorder %v872_v63, 8.507059e+37 }
 0x6a1   :  { %v1231_v54 = vpop.eup %1230 }
 0x6a2   :  { %v864_v56 = vmul.f32 %v1231_v54, %v862_v53  ;;  %v1233_v58 = vpop.eup %1232  ;;  %vm869_vm10 = vweird.f32 %v1231_v54 }
 0x6a3   :  { %v822_v60 = vadd.f32 1.0, %v1233_v58  ;;  %vm870_vm12 = vmor %vm868_vm11, %vm869_vm10  ;;  %vm607_vm11 = vcmask 523526  }
 0x6a4   :  { %v865_v57 = vsub.f32 1.0, %v864_v56 }
 0x6a5   :  { %1234 = vrcp.f32 %v822_v60  ;;  %v834_v10 = vand.u32 2147483648, %v822_v60  ;;  %vm828_vm1 = vweird.f32 %v822_v60  ;;  %v832_v11 = vand.u32 2147483647, %v822_v60 }
 0x6a6   :  { %v866_v59 = vmul.f32 %v1231_v54, %v865_v57 }
 0x6a7   :  { %v835_v13 = vor.u32 1.1754944e-38, %v834_v10  ;;  %vm833_vm3 = vcmp.eq.f32.partialorder %v832_v11, 8.507059e+37 }
 0x6a8   :  { %v867_v61 = vadd.f32 %v1231_v54, %v866_v59 }
 0x6aa   :  { %v871_v0 = vsel %vm870_vm12, %v1231_v54, %v867_v61  ;;  %vm909_vm12 = vcmask 519426  }
 0x6ab   :  { %v876_v3 = vsel %vm873_vm13, %v875_v1, %v871_v0  ;;  %v1235_v4 = vpop.eup %1234  ;;  %vm758_vm13 = vcmask 521476  }
 0x6ac   :  { %v824_v6 = vmul.f32 %v1235_v4, %v822_v60  ;;  %vm829_vm14 = vweird.f32 %v1235_v4  ;;  %v882_v21 = vmul.f32 %v880_v18, %v876_v3 }
 0x6ad   :  { %vm830_vm2 = vmor %vm828_vm1, %vm829_vm14  ;;  %vm903_vm14 = vcmask 259076   ;;  %vm1057_vm1 = vcmask 517376  }
 0x6ae   :  { %v825_v7 = vsub.f32 1.0, %v824_v6 }
 0x6b0   :  { %v826_v8 = vmul.f32 %v1235_v4, %v825_v7 }
 0x6b2   :  { %v827_v9 = vadd.f32 %v1235_v4, %v826_v8 }
 0x6b4   :  { %v831_v12 = vsel %vm830_vm2, %v1235_v4, %v827_v9  ;;  %vm1051_vm2 = vcmask 261126  }
 0x6b5   :  { %v836_v15 = vsel %vm833_vm3, %v835_v13, %v831_v12 }
 0x6b6   :  { %v842_v19 = vmul.f32 %v840_v17, %v836_v15 }
 0x6f2   :  { %v885_v2 = vpop.permute.xlu2 %884 }
 0x6f3   :  { %v887_v5 = vmul.f32 %v885_v2, %v876_v3 }
 0x6f5   :  { %889 = vrot.lane.b32.xlu1 %v887_v5, %s1421_s3 }
 0x709   :  { %v845_v14 = vpop.permute.xlu0 %844 }
 0x70a   :  { %v847_v16 = vmul.f32 %v845_v14, %v836_v15 }
 0x70c   :  { %849 = vrot.lane.b32.xlu2 %v847_v16, %s1421_s3 }
 0x766   :  { %v850_v22 = vpop.permute.xlu2 %849 }
 0x767   :  { %v890_v24 = vpop.permute.xlu1 %889  ;;  %v1818_v25 = vadd.f32 %v850_v22, %v842_v19 }
 0x768   :  { %v1820_v28 = vadd.f32 %v890_v24, %v882_v21 }
 0x769   :  { %1236 = vtanh.f32 %v1818_v25  ;;  %v988_v18 = vrot.slane %v1818_v25, 6 }
 0x76a   :  { %1238 = vtanh.f32 %v1820_v28  ;;  %v1028_v13 = vrot.slane %v1820_v28, 2 }
 0x76f   :  { %v1237_v27 = vpop.eup %1236 }
 0x770   :  { %v1239_v29 = vpop.eup %1238  ;;  %855 = vrot.lane.b32.xlu1 %v1237_v27, %s1420_s6 }
 0x771   :  { %895 = vrot.lane.b32.xlu0 %v1239_v29, %s1420_s6 }
 0x7e2   :  { %v856_v26 = vpop.permute.xlu1 %855 }
 0x7e3   :  { %v896_v20 = vpop.permute.xlu0 %895  ;;  %v858_v31 = vmul.f32 %v856_v26, %v836_v15 }
 0x7e4   :  { %v1826_v33 = vmul.f32 %v896_v20, %v876_v3 }
 0x7e5   :  { %900 = vrot.lane.b32.xlu2 %v858_v31, %s1421_s3  ;;  %v1067_v31 = vld [vmem:[#allocation8 + $0x38] sm:$0xff] }
 0x7e6   :  { %v911_v23 = vrot.slane %v1826_v33, 6  ;;  %1083 = vmatpush.msra.mxu2 %v1067_v31 }
 0x7e8   :  { %912 = vrot.lane.b32.xlu0 %v911_v23, %s1420_s6  ;;  %v1064_v23 = vld [vmem:[#allocation8 + $0x20] sm:$0xff] }
 0x83f   :  { %v1831_v34 = vpop.permute.xlu2 %900 }
 0x85a   :  { %v913_v35 = vpop.permute.xlu0 %912 }
 0x85b   :  { %v915_v36 = vsel %vm613_vm15, %v1831_v34, %v913_v35  ;;  %v1063_v35 = vld [vmem:[#allocation8 + $0x18] sm:$0xff] }
 0x85c   :  { %v917_v37 = vrot.slane %v915_v36, 4  ;;  %v1062_v36 = vld [vmem:[#allocation8 + $0x10] sm:$0xff] }
 0x85e   :  { %1163 = vmatmul.msk.f32.vlgmr.msra.gmra.mxu0 %vm150_vm0, %v917_v37  ;;  %1164 = vmatmul.msk.f32.vlgmr.msrb.gmra.mxu1 %vm150_vm0, %v917_v37  ;;  %v1061_v37 = vld [vmem:[#allocation8 + $0x8] sm:$0xff] }
 0x8db   :  { %v937_v38 = vpop.f32.mrf.mxu0  ;;  %v957_v39 = vpop.f32.mrf.mxu1 }
 0x8dc   :  { %v961_v40 = vrot.slane %v937_v38, 2  ;;  %v965_v41 = vadd.f32 %v957_v39, %v1750_v43  ;;  %v1060_v38 = vld [vmem:[#allocation8] sm:$0xff] }
 0x8de   :  { %v963_v42 = vadd.f32 %v961_v40, %v1757_v49  ;;  %v966_v45 = vadd.f32 %v1752_v44, %v965_v41  ;;  %v1110_v40 = vld [vmem:[%s1924_s14 + $0x70] sm:$0xff]  ;;  %v1109_v41 = vld [vmem:[%s1924_s14 + $0x68] sm:$0xff] }
 0x8e0   :  { %v964_v46 = vadd.f32 %v1759_v50, %v963_v42  ;;  %1240 = vtanh.f32 %v966_v45  ;;  %v1166_v51 = vmul.f32 -1.442695, %v966_v45  ;;  %v1108_v42 = vld [vmem:[%s1924_s14 + $0x60] sm:$0xff]  ;;  %v1107_v45 = vld [vmem:[%s1924_s14 + $0x58] sm:$0xff] }
 0x8e2   :  { %1242 = vtanh.f32 %v964_v46  ;;  %v1165_v54 = vmul.f32 -1.442695, %v964_v46  ;;  %v1106_v46 = vld [vmem:[%s1924_s14 + $0x50] sm:$0xff] }
 0x8e3   :  { %1244 = vpow2.f32 %v1166_v51  ;;  %v1103_v51 = vld [vmem:[%s1924_s14 + $0x38] sm:$0xff] }
 0x8e6   :  { %v1241_v47 = vpop.eup %1240 }
 0x8e7   :  { %1032 = vrot.lane.b32.xlu2 %v1241_v47, %s1420_s6  ;;  %v1105_v47 = vld [vmem:[%s1924_s14 + $0x48] sm:$0xff] }
 0x8e8   :  { %v1243_v48 = vpop.eup %1242 }
 0x8e9   :  { %992 = vrot.lane.b32.xlu1 %v1243_v48, %s1420_s6  ;;  %v1245_v52 = vpop.eup %1244  ;;  %v1104_v48 = vld [vmem:[%s1924_s14 + $0x40] sm:$0xff] }
 0x8ea   :  { %v1010_v53 = vadd.f32 1.0, %v1245_v52  ;;  %v1102_v52 = vld [vmem:[%s1924_s14 + $0x30] sm:$0xff] }
 0x8ec   :  { %1246 = vrcp.f32 %v1010_v53  ;;  %v1022_v58 = vand.u32 2147483648, %v1010_v53  ;;  %vm1016_vm4 = vweird.f32 %v1010_v53  ;;  %v1020_v59 = vand.u32 2147483647, %v1010_v53 }
 0x8ed   :  { %1248 = vpow2.f32 %v1165_v54  ;;  %v1099_v54 = vld [vmem:[%s1924_s14 + $0x18] sm:$0xff] }
 0x8ee   :  { %v1023_v61 = vor.u32 1.1754944e-38, %v1022_v58  ;;  %vm1021_vm6 = vcmp.eq.f32.partialorder %v1020_v59, 8.507059e+37 }
 0x8f2   :  { %v1247_v43 = vpop.eup %1246 }
 0x8f3   :  { %v1012_v49 = vmul.f32 %v1247_v43, %v1010_v53  ;;  %v1249_v50 = vpop.eup %1248  ;;  %vm1017_vm15 = vweird.f32 %v1247_v43  ;;  %v1101_v53 = vld [vmem:[%s1924_s14 + $0x28] sm:$0xff] }
 0x8f4   :  { %v970_v57 = vadd.f32 1.0, %v1249_v50  ;;  %vm1018_vm5 = vmor %vm1016_vm4, %vm1017_vm15  ;;  %v1097_v50 = vld [vmem:[%s1924_s14 + $0x8] sm:$0xff] }
 0x8f5   :  { %v1013_v44 = vsub.f32 1.0, %v1012_v49 }
 0x8f6   :  { %1250 = vrcp.f32 %v970_v57  ;;  %v982_v6 = vand.u32 2147483648, %v970_v57  ;;  %vm976_vm8 = vweird.f32 %v970_v57  ;;  %v980_v7 = vand.u32 2147483647, %v970_v57 }
 0x8f7   :  { %v1014_v55 = vmul.f32 %v1247_v43, %v1013_v44 }
 0x8f8   :  { %v983_v9 = vor.u32 1.1754944e-38, %v982_v6  ;;  %vm981_vm10 = vcmp.eq.f32.partialorder %v980_v7, 8.507059e+37 }
 0x8f9   :  { %v1015_v56 = vadd.f32 %v1247_v43, %v1014_v55  ;;  %v1098_v55 = vld [vmem:[%s1924_s14 + $0x10] sm:$0xff] }
 0x8fb   :  { %v1019_v60 = vsel %vm1018_vm5, %v1247_v43, %v1015_v56  ;;  %v1100_v43 = vld [vmem:[%s1924_s14 + $0x20] sm:$0xff] }
 0x8fc   :  { %v1024_v63 = vsel %vm1021_vm6, %v1023_v61, %v1019_v60  ;;  %v1251_v1 = vpop.eup %1250  ;;  %v1096_v56 = vld [vmem:[%s1924_s14] sm:$0xff]  ;;  %v1189_v61 = vld [vmem:[#allocation11] ss:$0 sm:$0xff] }
 0x8fd   :  { %v972_v2 = vmul.f32 %v1251_v1, %v970_v57  ;;  %vm977_vm7 = vweird.f32 %v1251_v1  ;;  %v1030_v14 = vmul.f32 %v1028_v13, %v1024_v63  ;;  %v1188_v57 = vld [vmem:[#allocation10] ss:$0 sm:$0xff] }
 0x8fe   :  { %vm978_vm9 = vmor %vm976_vm8, %vm977_vm7 }
 0x8ff   :  { %v973_v3 = vsub.f32 1.0, %v972_v2 }
 0x901   :  { %v974_v4 = vmul.f32 %v1251_v1, %v973_v3 }
 0x903   :  { %v975_v5 = vadd.f32 %v1251_v1, %v974_v4 }
 0x905   :  { %v979_v8 = vsel %vm978_vm9, %v1251_v1, %v975_v5 }
 0x906   :  { %v984_v11 = vsel %vm981_vm10, %v983_v9, %v979_v8 }
 0x907   :  { %v990_v19 = vmul.f32 %v988_v18, %v984_v11 }
 0x941   :  { %v1033_v62 = vpop.permute.xlu2 %1032 }
 0x942   :  { %v1035_v0 = vmul.f32 %v1033_v62, %v1024_v63 }
 0x944   :  { %1037 = vrot.lane.b32.xlu1 %v1035_v0, %s1421_s3 }
 0x94c   :  { %604 = vrot.lane.b32.xlu1 %v1774_v30, %s1420_s6 }
 0x95b   :  { %v993_v10 = vpop.permute.xlu1 %992 }
 0x95c   :  { %v995_v12 = vmul.f32 %v993_v10, %v984_v11 }
 0x95e   :  { %997 = vrot.lane.b32.xlu0 %v995_v12, %s1421_s3 }
 0x9b6   :  { %v1038_v30 = vpop.permute.xlu1 %1037 }
 0x9b7   :  { %v1040_v15 = vadd.f32 %v1038_v30, %v1030_v14 }
 0x9b9   :  { %1252 = vtanh.f32 %v1040_v15 }
 0x9be   :  { %v605_v16 = vpop.permute.xlu1 %604 }
 0x9bf   :  { %v1253_v17 = vpop.eup %1252  ;;  %608 = vst.msk [vmem:[#allocation2] sm:$0xc0] %vm607_vm11, %v605_v16 }
 0x9c0   :  { %1043 = vrot.lane.b32.xlu0 %v1253_v17, %s1420_s6 }
 0x9c8   :  { %906 = vrot.lane.b32.xlu0 %v1826_v33, %s1420_s6  ;;  %v1066_v33 = vld [vmem:[#allocation8 + $0x30] sm:$0xff] }
 0x9c9   :  { %1084 = vmatpush.msra.mxu2 %v1066_v33 }
 0x9d0   :  { %v998_v21 = vpop.permute.xlu0 %997 }
 0x9d1   :  { %v1000_v22 = vadd.f32 %v998_v21, %v990_v19 }
 0x9d3   :  { %1254 = vtanh.f32 %v1000_v22 }
 0x9d9   :  { %v1255_v24 = vpop.eup %1254 }
 0x9da   :  { %1003 = vrot.lane.b32.xlu2 %v1255_v24, %s1420_s6 }
 0x9e2   :  { %755 = vrot.lane.b32.xlu2 %v1800_v32, %s1420_s6  ;;  %v1065_v32 = vld [vmem:[#allocation8 + $0x28] sm:$0xff] }
 0x9e3   :  { %1085 = vmatpush.msra.mxu2 %v1065_v32 }
 0x9e5   :  { %1086 = vmatpush.msra.mxu2 %v1064_v23 }
 0x9e7   :  { %1087 = vmatpush.msra.mxu2 %v1063_v35 }
 0x9e9   :  { %1088 = vmatpush.msra.mxu2 %v1062_v36 }
 0x9eb   :  { %1089 = vmatpush.msra.mxu2 %v1061_v37 }
 0x9ed   :  { %1090 = vmatpush.msra.mxu2 %v1060_v38 }
 0xa32   :  { %v1044_v28 = vpop.permute.xlu0 %1043 }
 0xa33   :  { %v1046_v27 = vmul.f32 %v1044_v28, %v1024_v63 }
 0xa34   :  { %v1004_v29 = vpop.permute.xlu2 %1003 }
 0xa35   :  { %v1006_v26 = vmul.f32 %v1004_v29, %v984_v11  ;;  %1054 = vrot.lane.b32.xlu2 %v1046_v27, %s1420_s6 }
 0xa37   :  { %1048 = vrot.lane.b32.xlu1 %v1006_v26, %s1421_s3 }
 0xa3a   :  { %v907_v25 = vpop.permute.xlu0 %906 }
 0xa3b   :  { %910 = vst.msk [vmem:[#allocation2] sm:$0xc] %vm909_vm12, %v907_v25 }
 0xa3c   :  { %v756_v20 = vpop.permute.xlu2 %755 }
 0xa3d   :  { %759 = vst.msk [vmem:[#allocation2] sm:$0x30] %vm758_vm13, %v756_v20 }
 0xa3e   :  { %904 = vst.msk [vmem:[#allocation2] sm:$0x30] %vm903_vm14, %v1831_v34  ;;  %v1111_v34 = vld [vmem:[%s1924_s14 + $0x78] sm:$0xff] }
 0xa3f   :  { %1116 = vmatpush.msrb.mxu3 %v1111_v34 }
 0xa41   :  { %1117 = vmatpush.msrb.mxu3 %v1110_v40 }
 0xa43   :  { %1118 = vmatpush.msrb.mxu3 %v1109_v41 }
 0xa45   :  { %1119 = vmatpush.msrb.mxu3 %v1108_v42 }
 0xa47   :  { %1120 = vmatpush.msrb.mxu3 %v1107_v45 }
 0xa49   :  { %1121 = vmatpush.msrb.mxu3 %v1106_v46 }
 0xa4b   :  { %1122 = vmatpush.msrb.mxu3 %v1105_v47 }
 0xa4d   :  { %1123 = vmatpush.msrb.mxu3 %v1104_v48 }
 0xa4f   :  { %1124 = vmatpush.msrb.mxu3 %v1103_v51 }
 0xa51   :  { %1125 = vmatpush.msrb.mxu3 %v1102_v52 }
 0xa53   :  { %1126 = vmatpush.msrb.mxu3 %v1101_v53 }
 0xa55   :  { %1127 = vmatpush.msrb.mxu3 %v1100_v43 }
 0xa57   :  { %1128 = vmatpush.msrb.mxu3 %v1099_v54 }
 0xa59   :  { %1129 = vmatpush.msrb.mxu3 %v1098_v55 }
 0xa5b   :  { %1130 = vmatpush.msrb.mxu3 %v1097_v50 }
 0xa5d   :  { %1131 = vmatpush.msrb.mxu3 %v1096_v56 }
 0xa8f   :  { %v1055_v39 = vpop.permute.xlu2 %1054 }
 0xa90   :  { %1058 = vst.msk [vmem:[#allocation2] sm:$0x3] %vm1057_vm1, %v1055_v39 }
 0xaa9   :  { %v1049_v49 = vpop.permute.xlu1 %1048 }
 0xaaa   :  { %1052 = vst.msk [vmem:[#allocation2] sm:$0xc0] %vm1051_vm2, %v1049_v49 }
 0xab1   :  { %v1059_v44 = vld [vmem:[#allocation2] sm:$0xff] }
 0xab2   :  { %1167 = vmatmul.msk.f32.vlgmr.msra.gmra.mxu2 %vm150_vm0, %v1059_v44  ;;  %vm1136_vm0 = vcmask 15360  }
 0xb35   :  { %v1092_v58 = vpop.f32.mrf.mxu2 }
 0xb36   :  { %v1093_v59 = vadd.f32 %v1188_v57, %v1092_v58 }
 0xb38   :  { %v1095_v60 = vmax.f32 %v1093_v59, 0.0 }
 0xb3a   :  { %1132 = vmatmul.f32.vlgmr.msrb.gmra.mxu3 %v1095_v60 }
 0xbbd   :  { %v1133_v62 = vpop.f32.mrf.mxu3 }
 0xbbe   :  { %v1134_v63 = vadd.f32 %v1189_v61, %v1133_v62 }
 0xbc0   :  { %1137 = vst.msk [vmem:[%s1926_s16] sm:$0xff] %vm1136_vm0, %v1134_v63 }
 0xbc1   :  { %1142 = vsyncpa [#allocation4], 1 }
 0xbc2   :  { %1143 = vsyncpa [#allocation6], 1 }
 0xbc3   :  { %1144 = vsyncpa [#allocation9], 1 }
 0xbc4   :  { %1145 = vsyncpa [#allocation12], 1 }

</bundles_post_ra>
